<compile_context>
chip_gen: v5e
topology: v5e:2x2
jax: 0.10.0
libtpu: 0.0.40
codegen_flags: <defaults>
</compile_context>

<pallas_src>
import functools

import jax
import jax.numpy as jnp
from jax import lax
from jax.experimental import pallas as pl
from jax.experimental.pallas import tpu as pltpu


# ----------------------------- Pallas kernel ------------------------------- #

def _lattice_lstm_seq_kernel(T, D, H, C_max,
                             cnum_ref,                         # SMEM (T,) int32
                             x_ref, cin_ref, h0_ref, c0_ref,   # data
                             wxg_ref, bxg_ref, whh_ref,        # gate weights
                             wxa_ref, bxa_ref, awhh_ref,       # alpha weights
                             out_ref,                          # (T, 2H)
                             xg_sc, xa_sc):                    # VMEM scratch
    # One-shot x-side projections for the whole sequence (off the recurrent
    # critical path): turns T single-row matmuls into one T-row matmul.
    x = x_ref[...]                                             # (T, D)
    xg_sc[...] = (jnp.dot(x, wxg_ref[...], preferred_element_type=jnp.float32)
                  + bxg_ref[...])                              # (T, 4H)
    xa_sc[...] = (jnp.dot(x, wxa_ref[...], preferred_element_type=jnp.float32)
                  + bxa_ref[...])                              # (T, H)

    whh = whh_ref[...]                                         # (H, 4H)
    awhh = awhh_ref[...]                                       # (H, H)
    # Hoisted mask iota (JAX does not CSE broadcast_in_dim across iterations).
    row = jax.lax.broadcasted_iota(jnp.int32, (C_max, H), 0)

    def step(t, carry):
        h_prev, c_prev = carry                                 # each (1, H)

        # Recurrent gate matmul: (1, H) @ (H, 4H) -> exactly 128 output lanes.
        z = (jnp.dot(h_prev, whh, preferred_element_type=jnp.float32)
             + xg_sc[pl.ds(t, 1), :])                          # (1, 4H)
        sig = jax.nn.sigmoid(z[:, :3 * H])                     # fused i|f|o
        i = sig[:, 0 * H:1 * H]
        f = sig[:, 1 * H:2 * H]                                # "+1" baked in bias
        o = sig[:, 2 * H:3 * H]
        g = jnp.tanh(z[:, 3 * H:4 * H])

        # Plain-LSTM candidate.
        c_plain = f * c_prev + i * g

        # Lexicon-merge candidate (padded rows masked by the runtime count).
        cin = cin_ref[pl.ds(pl.multiple_of(t * C_max, C_max), C_max), :]
        alpha = jax.nn.sigmoid(
            xa_sc[pl.ds(t, 1), :]
            + jnp.dot(cin, awhh, preferred_element_type=jnp.float32))
        c_num = cnum_ref[t]
        exp_a = jnp.where(row < c_num, jnp.exp(alpha), 0.0)    # (C_max, H)
        exp_i = jnp.exp(i)                                     # (1, H)
        # exp(cat([i, alpha])) / sum without concat; one reciprocal + two muls.
        inv = pl.reciprocal(exp_i + jnp.sum(exp_a, axis=0, keepdims=True),
                            approx=False)
        c_lex = (g * exp_i + jnp.sum(cin * exp_a, axis=0, keepdims=True)) * inv

        # Shared tail (branch select + tanh + single combined store).
        c1 = jnp.where(c_num == 0, c_plain, c_lex)
        h1 = o * jnp.tanh(c1)
        out_ref[pl.ds(t, 1), :] = jnp.concatenate([h1, c1], axis=-1)
        return h1, c1

    lax.fori_loop(0, T, step, (h0_ref[...], c0_ref[...]), unroll=True)


# ------------------------------ parameters --------------------------------- #

def init_params(key, input_size, hidden_size, is_bichar):
    """Deterministic stand-in for reset_parameters(), same weight layout.

    # TODO(synk): the orthonormal pretraining optimisation loop itself is not
    # replicated; a scaled normal matrix is used as the deterministic source.
    """
    if is_bichar:
        input_size = input_size * 2
    D, H = input_size, hidden_size
    k1, k2 = jax.random.split(key, 2)
    W = jax.random.normal(k1, (H, H + D), jnp.float32) / jnp.sqrt(H)
    W_h, W_x = W[:, :H], W[:, H:]
    W2 = jax.random.normal(k2, (H, H + D), jnp.float32) / jnp.sqrt(H)
    W2_x = W2[:, H:]
    return dict(
        # stored transposed: (in_features, out_features)
        w_ih=jnp.concatenate([W_x] * 4, axis=0).T,     # (D, 4H)
        b_ih=jnp.zeros((1, 4 * H), jnp.float32),
        w_hh=jnp.concatenate([W_h] * 4, axis=0).T,     # (H, 4H)
        b_hh=jnp.zeros((1, 4 * H), jnp.float32),
        aw_ih=W2_x.T,                                  # (D, H)
        ab_ih=jnp.zeros((1, H), jnp.float32),
        aw_hh=W_h.T,                                   # (H, H)
        ab_hh=jnp.zeros((1, H), jnp.float32),
    )


def fuse_params(raw, input_size_eff, hidden_size):
    """Fold biases: x-side gate bias gets b_ih + b_hh and the '+1' on f;
    x-side alpha bias gets ab_ih + ab_hh (both broadcast in the original)."""
    H = hidden_size
    bxg = raw["b_ih"] + raw["b_hh"]
    bxg = bxg.at[:, H:2 * H].add(1.0)
    return dict(
        wx_gates=raw["w_ih"],                  # (D, 4H)
        bx_gates=bxg,                          # (1, 4H)
        w_hh=raw["w_hh"],                      # (H, 4H)
        wx_alpha=raw["aw_ih"],                 # (D, H)
        bx_alpha=raw["ab_ih"] + raw["ab_hh"],  # (1, H)
        aw_hh=raw["aw_hh"],                    # (H, H)
    )


# ------------------------------ Python wrappers ----------------------------- #

def lattice_lstm_sequence(fused, x_seq2d, cin_seq, c_num_seq, h0, c0,
                          hidden_size, c_max):
    """Run T chained MultiInputLSTMCell steps inside one pallas_call.

    x_seq2d:   (T, D)         per-step inputs
    cin_seq:   (T, c_max, H)  zero-padded lexicon candidates per step
    c_num_seq: (T,) int32     valid lexicon rows per step (0 = plain LSTM)
    """
    T, D = x_seq2d.shape
    H = hidden_size
    cin_flat = cin_seq.reshape(T * c_max, H)

    grid_spec = pltpu.PrefetchScalarGridSpec(
        num_scalar_prefetch=1,
        grid=(1,),
        in_specs=[
            pl.BlockSpec((T, D), lambda i, cnum: (0, 0)),              # x_seq
            pl.BlockSpec((T * c_max, H), lambda i, cnum: (0, 0)),      # cin_seq
            pl.BlockSpec((1, H), lambda i, cnum: (0, 0)),              # h0
            pl.BlockSpec((1, H), lambda i, cnum: (0, 0)),              # c0
            pl.BlockSpec((D, 4 * H), lambda i, cnum: (0, 0)),          # wx_gates
            pl.BlockSpec((1, 4 * H), lambda i, cnum: (0, 0)),          # bx_gates
            pl.BlockSpec((H, 4 * H), lambda i, cnum: (0, 0)),          # w_hh
            pl.BlockSpec((D, H), lambda i, cnum: (0, 0)),              # wx_alpha
            pl.BlockSpec((1, H), lambda i, cnum: (0, 0)),              # bx_alpha
            pl.BlockSpec((H, H), lambda i, cnum: (0, 0)),              # aw_hh
        ],
        out_specs=pl.BlockSpec((T, 2 * H), lambda i, cnum: (0, 0)),    # [h | c]
        scratch_shapes=[pltpu.VMEM((T, 4 * H), jnp.float32),           # X_gate
                        pltpu.VMEM((T, H), jnp.float32)],              # X_alpha
    )

    out = pl.pallas_call(
        functools.partial(_lattice_lstm_seq_kernel, T, D, H, c_max),
        grid_spec=grid_spec,
        out_shape=jax.ShapeDtypeStruct((T, 2 * H), jnp.float32),
        compiler_params=pltpu.CompilerParams(
            dimension_semantics=("arbitrary",)),
    )(c_num_seq, x_seq2d, cin_flat, h0, c0,
      fused["wx_gates"], fused["bx_gates"], fused["w_hh"],
      fused["wx_alpha"], fused["bx_alpha"], fused["aw_hh"])
    return out[:, :H], out[:, H:]


def multi_input_lstm_cell(fused, x, lexi_input, hx, hidden_size, c_max=8):
    """Module-compatible single-step forward (batch_size == 1), T=1 sequence."""
    h0, c0 = hx
    assert h0.shape[0] == 1, "reference module asserts batch_size == 1"
    H = hidden_size
    c_num = len(lexi_input)
    assert c_num <= c_max
    if c_num > 0:
        cin = jnp.concatenate(lexi_input, axis=0)
        if c_num < c_max:
            cin = jnp.concatenate(
                [cin, jnp.zeros((c_max - c_num, H), jnp.float32)], axis=0)
    else:
        cin = jnp.zeros((c_max, H), jnp.float32)
    h_seq, c_seq = lattice_lstm_sequence(
        fused, x, cin[None, :, :], jnp.array([c_num], jnp.int32),
        h0, c0, H, c_max)
    return h_seq, c_seq                         # each (1, H)


# ------------------------- pure-JAX reference (check) ----------------------- #

def reference_forward(params, x, lexi_input, hx, hidden_size):
    h0, c0 = hx
    H = hidden_size
    lstm = (x @ params["w_ih"] + params["b_ih"]
            + h0 @ params["w_hh"] + params["b_hh"])
    i = jax.nn.sigmoid(lstm[:, 0 * H:1 * H])
    f = jax.nn.sigmoid(lstm[:, 1 * H:2 * H] + 1.0)
    o = jax.nn.sigmoid(lstm[:, 2 * H:3 * H])
    g = jnp.tanh(lstm[:, 3 * H:4 * H])
    if len(lexi_input) == 0:
        c1 = f * c0 + i * g
        h1 = o * jnp.tanh(c1)
        return h1, c1
    cin = jnp.concatenate(lexi_input, axis=0)
    alpha = jax.nn.sigmoid(x @ params["aw_ih"] + params["ab_ih"]
                           + cin @ params["aw_hh"] + params["ab_hh"])
    alpha = jnp.exp(jnp.concatenate([i, alpha], axis=0))
    alpha = alpha / jnp.sum(alpha, axis=0)
    merge = jnp.concatenate([g, cin], axis=0)
    c1 = jnp.sum(merge * alpha, axis=0, keepdims=True)
    h1 = o * jnp.tanh(c1)
    return h1, c1


def reference_sequence(raw, x_seq2d, lexi_lists, h0, c0, hidden_size):
    h, c = h0, c0
    hs, cs = [], []
    for t in range(len(lexi_lists)):
        h, c = reference_forward(raw, x_seq2d[t:t + 1], lexi_lists[t], (h, c),
                                 hidden_size)
        hs.append(h)
        cs.append(c)
    return jnp.concatenate(hs, axis=0), jnp.concatenate(cs, axis=0)


# ----------------------------------- main ----------------------------------- #

if __name__ == "__main__":
    input_size, hidden_size, is_bichar = 16, 32, True   # effective input dim 32
    D = input_size * 2 if is_bichar else input_size
    H = hidden_size
    C_MAX = 8
    T = 8

    key = jax.random.PRNGKey(0)
    kp, kx, kh, kc, kl = jax.random.split(key, 5)
    raw = init_params(kp, input_size, hidden_size, is_bichar)
    fused = fuse_params(raw, D, H)

    x_seq2d = jax.random.normal(kx, (T, D), jnp.float32)
    h0 = jax.random.normal(kh, (1, H), jnp.float32)
    c0 = jax.random.normal(kc, (1, H), jnp.float32)

    # Per-step lexicon candidate counts (mix of the "plain LSTM" and "lexicon"
    # paths inside one compiled kernel).
    c_nums = [3, 0, 5, 1, 0, 8, 2, 0]
    lexi_lists, cin_rows = [], []
    for t, n in enumerate(c_nums):
        full = jax.random.normal(jax.random.fold_in(kl, t), (C_MAX, H),
                                 jnp.float32)
        lexi_lists.append([full[j:j + 1] for j in range(n)])
        cin_rows.append(jnp.where(jnp.arange(C_MAX)[:, None] < n, full, 0.0))
    cin_seq = jnp.stack(cin_rows, axis=0)               # (T, C_MAX, H)
    c_num_seq = jnp.array(c_nums, jnp.int32)

    # fused whole-sequence kernel
    h_seq, c_seq = lattice_lstm_sequence(fused, x_seq2d, cin_seq, c_num_seq,
                                         h0, c0, H, C_MAX)
    jax.block_until_ready((h_seq, c_seq))
    h_ref, c_ref = reference_sequence(raw, x_seq2d, lexi_lists, h0, c0, H)
    assert jnp.allclose(h_seq, h_ref, atol=1e-5, rtol=1e-5), "h mismatch (sequence)"
    assert jnp.allclose(c_seq, c_ref, atol=1e-5, rtol=1e-5), "c mismatch (sequence)"

    # module-style single-cell call, lexicon branch
    lexi = [jax.random.normal(jax.random.fold_in(kl, 100 + i), (1, H),
                              jnp.float32) for i in range(4)]
    h1, c1 = multi_input_lstm_cell(fused, x_seq2d[:1], lexi, (h0, c0), H, C_MAX)
    jax.block_until_ready((h1, c1))
    h1_r, c1_r = reference_forward(raw, x_seq2d[:1], lexi, (h0, c0), H)
    assert jnp.allclose(h1, h1_r, atol=1e-5, rtol=1e-5), "h_1 mismatch (lexi branch)"
    assert jnp.allclose(c1, c1_r, atol=1e-5, rtol=1e-5), "c_1 mismatch (lexi branch)"

    # module-style single-cell call, plain-LSTM branch
    h1b, c1b = multi_input_lstm_cell(fused, x_seq2d[:1], [], (h0, c0), H, C_MAX)
    jax.block_until_ready((h1b, c1b))
    h1b_r, c1b_r = reference_forward(raw, x_seq2d[:1], [], (h0, c0), H)
    assert jnp.allclose(h1b, h1b_r, atol=1e-5, rtol=1e-5), "h_1 mismatch (no-lexi)"
    assert jnp.allclose(c1b, c1b_r, atol=1e-5, rtol=1e-5), "c_1 mismatch (no-lexi)"

    print("KERNEL_OK")
</pallas_src>

<mosaic_0001>
module attributes {stable_mosaic.version = 11 : i64} {
  func.func @_lattice_lstm_seq_kernel(%arg0: i32, %arg1: memref<8xi32, #tpu.memory_space<smem>>, %arg2: memref<8x32xf32, #tpu.memory_space<vmem>>, %arg3: memref<64x32xf32, #tpu.memory_space<vmem>>, %arg4: memref<1x32xf32, #tpu.memory_space<vmem>>, %arg5: memref<1x32xf32, #tpu.memory_space<vmem>>, %arg6: memref<32x128xf32, #tpu.memory_space<vmem>>, %arg7: memref<1x128xf32, #tpu.memory_space<vmem>>, %arg8: memref<32x128xf32, #tpu.memory_space<vmem>>, %arg9: memref<32x32xf32, #tpu.memory_space<vmem>>, %arg10: memref<1x32xf32, #tpu.memory_space<vmem>>, %arg11: memref<32x32xf32, #tpu.memory_space<vmem>>, %arg12: memref<8x64xf32, #tpu.memory_space<vmem>>, %arg13: memref<8x128xf32, #tpu.memory_space<vmem>>, %arg14: memref<8x32xf32, #tpu.memory_space<vmem>>) attributes {dimension_semantics = [#tpu.dimension_semantics<arbitrary>], iteration_bounds = array<i64: 1>, scalar_prefetch = 1 : i64, scratch_operands = 2 : i64, tpu.core_type = #tpu.core_type<tc>, window_params = [{pipeline_mode = #tpu.pipeline_mode<synchronous>, transform_indices = @transform_0, window_bounds = array<i64: 8, 32>}, {pipeline_mode = #tpu.pipeline_mode<synchronous>, transform_indices = @transform_1, window_bounds = array<i64: 64, 32>}, {pipeline_mode = #tpu.pipeline_mode<synchronous>, transform_indices = @transform_2, window_bounds = array<i64: 1, 32>}, {pipeline_mode = #tpu.pipeline_mode<synchronous>, transform_indices = @transform_3, window_bounds = array<i64: 1, 32>}, {pipeline_mode = #tpu.pipeline_mode<synchronous>, transform_indices = @transform_4, window_bounds = array<i64: 32, 128>}, {pipeline_mode = #tpu.pipeline_mode<synchronous>, transform_indices = @transform_5, window_bounds = array<i64: 1, 128>}, {pipeline_mode = #tpu.pipeline_mode<synchronous>, transform_indices = @transform_6, window_bounds = array<i64: 32, 128>}, {pipeline_mode = #tpu.pipeline_mode<synchronous>, transform_indices = @transform_7, window_bounds = array<i64: 32, 32>}, {pipeline_mode = #tpu.pipeline_mode<synchronous>, transform_indices = @transform_8, window_bounds = array<i64: 1, 32>}, {pipeline_mode = #tpu.pipeline_mode<synchronous>, transform_indices = @transform_9, window_bounds = array<i64: 32, 32>}, {pipeline_mode = #tpu.pipeline_mode<synchronous>, transform_indices = @transform_10, window_bounds = array<i64: 8, 64>}]} {
    %c0 = arith.constant 0 : index
    %c0_0 = arith.constant 0 : index
    %0 = vector.load %arg2[%c0, %c0_0] : memref<8x32xf32, #tpu.memory_space<vmem>>, vector<8x32xf32>
    %c0_1 = arith.constant 0 : index
    %c0_2 = arith.constant 0 : index
    %1 = vector.load %arg6[%c0_1, %c0_2] : memref<32x128xf32, #tpu.memory_space<vmem>>, vector<32x128xf32>
    %cst = arith.constant dense<0.000000e+00> : vector<8x128xf32>
    %2 = tpu.matmul %0, %1, %cst {dimension_numbers = #tpu.dot_dimension_numbers<[1], [0], [0], [1], [0, 0, 1, 1], [], []>} : vector<8x32xf32>, vector<32x128xf32>, vector<8x128xf32> -> vector<8x128xf32>
    %c0_3 = arith.constant 0 : index
    %c0_4 = arith.constant 0 : index
    %3 = vector.load %arg7[%c0_3, %c0_4] : memref<1x128xf32, #tpu.memory_space<vmem>>, vector<1x128xf32>
    %4 = vector.broadcast %3 : vector<1x128xf32> to vector<8x128xf32>
    %5 = arith.addf %2, %4 : vector<8x128xf32>
    %c0_5 = arith.constant 0 : index
    %c0_6 = arith.constant 0 : index
    %6 = vector.load %arg13[%c0_5, %c0_6] : memref<8x128xf32, #tpu.memory_space<vmem>>, vector<8x128xf32>
    tpu.vector_store %arg13[%c0_5, %c0_6], %5 {strides = array<i32>} : memref<8x128xf32, #tpu.memory_space<vmem>>, vector<8x128xf32>,
    %c0_7 = arith.constant 0 : index
    %c0_8 = arith.constant 0 : index
    %7 = vector.load %arg9[%c0_7, %c0_8] : memref<32x32xf32, #tpu.memory_space<vmem>>, vector<32x32xf32>
    %cst_9 = arith.constant dense<0.000000e+00> : vector<8x32xf32>
    %8 = tpu.matmul %0, %7, %cst_9 {dimension_numbers = #tpu.dot_dimension_numbers<[1], [0], [0], [1], [0, 0, 1, 1], [], []>} : vector<8x32xf32>, vector<32x32xf32>, vector<8x32xf32> -> vector<8x32xf32>
    %c0_10 = arith.constant 0 : index
    %c0_11 = arith.constant 0 : index
    %9 = vector.load %arg10[%c0_10, %c0_11] : memref<1x32xf32, #tpu.memory_space<vmem>>, vector<1x32xf32>
    %10 = vector.broadcast %9 : vector<1x32xf32> to vector<8x32xf32>
    %11 = arith.addf %8, %10 : vector<8x32xf32>
    %c0_12 = arith.constant 0 : index
    %c0_13 = arith.constant 0 : index
    %12 = vector.load %arg14[%c0_12, %c0_13] : memref<8x32xf32, #tpu.memory_space<vmem>>, vector<8x32xf32>
    tpu.vector_store %arg14[%c0_12, %c0_13], %11 {strides = array<i32>} : memref<8x32xf32, #tpu.memory_space<vmem>>, vector<8x32xf32>,
    %c0_14 = arith.constant 0 : index
    %c0_15 = arith.constant 0 : index
    %13 = vector.load %arg8[%c0_14, %c0_15] : memref<32x128xf32, #tpu.memory_space<vmem>>, vector<32x128xf32>
    %c0_16 = arith.constant 0 : index
    %c0_17 = arith.constant 0 : index
    %14 = vector.load %arg11[%c0_16, %c0_17] : memref<32x32xf32, #tpu.memory_space<vmem>>, vector<32x32xf32>
    %15 = tpu.iota {dimensions = array<i32: 0>} : vector<8x32xi32>
    %c0_18 = arith.constant 0 : index
    %c0_19 = arith.constant 0 : index
    %16 = vector.load %arg4[%c0_18, %c0_19] : memref<1x32xf32, #tpu.memory_space<vmem>>, vector<1x32xf32>
    %c0_20 = arith.constant 0 : index
    %c0_21 = arith.constant 0 : index
    %17 = vector.load %arg5[%c0_20, %c0_21] : memref<1x32xf32, #tpu.memory_space<vmem>>, vector<1x32xf32>
    %c0_i32 = arith.constant 0 : i32
    %cst_22 = arith.constant dense<0.000000e+00> : vector<1x128xf32>
    %18 = tpu.matmul %16, %13, %cst_22 {dimension_numbers = #tpu.dot_dimension_numbers<[1], [0], [0], [1], [0, 0, 1, 1], [], []>} : vector<1x32xf32>, vector<32x128xf32>, vector<1x128xf32> -> vector<1x128xf32>
    %19 = arith.index_cast %c0_i32 : i32 to index
    %c0_23 = arith.constant 0 : index
    %20 = vector.load %arg13[%19, %c0_23] : memref<8x128xf32, #tpu.memory_space<vmem>>, vector<1x128xf32>
    %21 = arith.addf %18, %20 : vector<1x128xf32>
    %22 = vector.extract_strided_slice %21 {offsets = [0, 0], sizes = [1, 96], strides = [1, 1]} : vector<1x128xf32> to vector<1x96xf32>
    %23 = arith.negf %22 : vector<1x96xf32>
    %24 = math.exp %23 : vector<1x96xf32>
    %cst_24 = arith.constant 1.000000e+00 : f32
    %25 = vector.broadcast %cst_24 : f32 to vector<1x96xf32>
    %26 = arith.addf %25, %24 : vector<1x96xf32>
    %27 = arith.divf %25, %26 : vector<1x96xf32>
    %28 = vector.extract_strided_slice %27 {offsets = [0, 0], sizes = [1, 32], strides = [1, 1]} : vector<1x96xf32> to vector<1x32xf32>
    %29 = vector.extract_strided_slice %27 {offsets = [0, 32], sizes = [1, 32], strides = [1, 1]} : vector<1x96xf32> to vector<1x32xf32>
    %30 = vector.extract_strided_slice %27 {offsets = [0, 64], sizes = [1, 32], strides = [1, 1]} : vector<1x96xf32> to vector<1x32xf32>
    %31 = vector.extract_strided_slice %21 {offsets = [0, 96], sizes = [1, 32], strides = [1, 1]} : vector<1x128xf32> to vector<1x32xf32>
    %32 = math.tanh %31 : vector<1x32xf32>
    %33 = arith.mulf %29, %17 : vector<1x32xf32>
    %34 = arith.mulf %28, %32 : vector<1x32xf32>
    %35 = arith.addf %33, %34 : vector<1x32xf32>
    %c8_i32 = arith.constant 8 : i32
    %36 = arith.muli %c0_i32, %c8_i32 : i32
    %37 = tpu.assume_multiple %36, 8 : i32
    %38 = arith.index_cast %37 : i32 to index
    %c0_25 = arith.constant 0 : index
    %39 = vector.load %arg3[%38, %c0_25] : memref<64x32xf32, #tpu.memory_space<vmem>>, vector<8x32xf32>
    %40 = arith.index_cast %c0_i32 : i32 to index
    %c0_26 = arith.constant 0 : index
    %41 = vector.load %arg14[%40, %c0_26] : memref<8x32xf32, #tpu.memory_space<vmem>>, vector<1x32xf32>
    %cst_27 = arith.constant dense<0.000000e+00> : vector<8x32xf32>
    %42 = tpu.matmul %39, %14, %cst_27 {dimension_numbers = #tpu.dot_dimension_numbers<[1], [0], [0], [1], [0, 0, 1, 1], [], []>} : vector<8x32xf32>, vector<32x32xf32>, vector<8x32xf32> -> vector<8x32xf32>
    %43 = vector.broadcast %41 : vector<1x32xf32> to vector<8x32xf32>
    %44 = arith.addf %43, %42 : vector<8x32xf32>
    %45 = arith.negf %44 : vector<8x32xf32>
    %46 = math.exp %45 : vector<8x32xf32>
    %cst_28 = arith.constant 1.000000e+00 : f32
    %47 = vector.broadcast %cst_28 : f32 to vector<8x32xf32>
    %48 = arith.addf %47, %46 : vector<8x32xf32>
    %49 = arith.divf %47, %48 : vector<8x32xf32>
    %50 = arith.index_cast %c0_i32 : i32 to index
    %51 = memref.load %arg1[%50] : memref<8xi32, #tpu.memory_space<smem>>
    %52 = vector.broadcast %51 : i32 to vector<8x32xi32>
    %53 = arith.cmpi slt, %15, %52 : vector<8x32xi32>
    %54 = math.exp %49 : vector<8x32xf32>
    %cst_29 = arith.constant 0.000000e+00 : f32
    %55 = vector.broadcast %cst_29 : f32 to vector<8x32xf32>
    %56 = arith.select %53, %54, %55 : vector<8x32xi1>, vector<8x32xf32>
    %57 = math.exp %28 : vector<1x32xf32>
    %cst_30 = arith.constant dense<0.000000e+00> : vector<32xf32>
    %58 = vector.multi_reduction <add>, %56, %cst_30 [0] : vector<8x32xf32> to vector<32xf32>
    %59 = vector.shape_cast %58 : vector<32xf32> to vector<1x32xf32>
    %60 = arith.addf %57, %59 : vector<1x32xf32>
    %61 = tpu.reciprocal %60 : vector<1x32xf32> -> vector<1x32xf32>
    %62 = arith.mulf %32, %57 : vector<1x32xf32>
    %63 = arith.mulf %39, %56 : vector<8x32xf32>
    %cst_31 = arith.constant dense<0.000000e+00> : vector<32xf32>
    %64 = vector.multi_reduction <add>, %63, %cst_31 [0] : vector<8x32xf32> to vector<32xf32>
    %65 = vector.shape_cast %64 : vector<32xf32> to vector<1x32xf32>
    %66 = arith.addf %62, %65 : vector<1x32xf32>
    %67 = arith.mulf %66, %61 : vector<1x32xf32>
    %c0_i32_32 = arith.constant 0 : i32
    %68 = arith.cmpi eq, %51, %c0_i32_32 : i32
    %69 = arith.select %68, %35, %67 : vector<1x32xf32>
    %70 = math.tanh %69 : vector<1x32xf32>
    %71 = arith.mulf %30, %70 : vector<1x32xf32>
    %72 = tpu.concatenate %71, %69 in 1 : vector<1x32xf32>, vector<1x32xf32> -> vector<1x64xf32>
    %73 = arith.index_cast %c0_i32 : i32 to index
    %c0_33 = arith.constant 0 : index
    %74 = vector.load %arg12[%73, %c0_33] : memref<8x64xf32, #tpu.memory_space<vmem>>, vector<1x64xf32>
    tpu.vector_store %arg12[%73, %c0_33], %72 {strides = array<i32>} : memref<8x64xf32, #tpu.memory_space<vmem>>, vector<1x64xf32>,
    %c1_i32 = arith.constant 1 : i32
    %cst_34 = arith.constant dense<0.000000e+00> : vector<1x128xf32>
    %75 = tpu.matmul %71, %13, %cst_34 {dimension_numbers = #tpu.dot_dimension_numbers<[1], [0], [0], [1], [0, 0, 1, 1], [], []>} : vector<1x32xf32>, vector<32x128xf32>, vector<1x128xf32> -> vector<1x128xf32>
    %76 = arith.index_cast %c1_i32 : i32 to index
    %c0_35 = arith.constant 0 : index
    %77 = vector.load %arg13[%76, %c0_35] : memref<8x128xf32, #tpu.memory_space<vmem>>, vector<1x128xf32>
    %78 = arith.addf %75, %77 : vector<1x128xf32>
    %79 = vector.extract_strided_slice %78 {offsets = [0, 0], sizes = [1, 96], strides = [1, 1]} : vector<1x128xf32> to vector<1x96xf32>
    %80 = arith.negf %79 : vector<1x96xf32>
    %81 = math.exp %80 : vector<1x96xf32>
    %cst_36 = arith.constant 1.000000e+00 : f32
    %82 = vector.broadcast %cst_36 : f32 to vector<1x96xf32>
    %83 = arith.addf %82, %81 : vector<1x96xf32>
    %84 = arith.divf %82, %83 : vector<1x96xf32>
    %85 = vector.extract_strided_slice %84 {offsets = [0, 0], sizes = [1, 32], strides = [1, 1]} : vector<1x96xf32> to vector<1x32xf32>
    %86 = vector.extract_strided_slice %84 {offsets = [0, 32], sizes = [1, 32], strides = [1, 1]} : vector<1x96xf32> to vector<1x32xf32>
    %87 = vector.extract_strided_slice %84 {offsets = [0, 64], sizes = [1, 32], strides = [1, 1]} : vector<1x96xf32> to vector<1x32xf32>
    %88 = vector.extract_strided_slice %78 {offsets = [0, 96], sizes = [1, 32], strides = [1, 1]} : vector<1x128xf32> to vector<1x32xf32>
    %89 = math.tanh %88 : vector<1x32xf32>
    %90 = arith.mulf %86, %69 : vector<1x32xf32>
    %91 = arith.mulf %85, %89 : vector<1x32xf32>
    %92 = arith.addf %90, %91 : vector<1x32xf32>
    %c8_i32_37 = arith.constant 8 : i32
    %93 = arith.muli %c1_i32, %c8_i32_37 : i32
    %94 = tpu.assume_multiple %93, 8 : i32
    %95 = arith.index_cast %94 : i32 to index
    %c0_38 = arith.constant 0 : index
    %96 = vector.load %arg3[%95, %c0_38] : memref<64x32xf32, #tpu.memory_space<vmem>>, vector<8x32xf32>
    %97 = arith.index_cast %c1_i32 : i32 to index
    %c0_39 = arith.constant 0 : index
    %98 = vector.load %arg14[%97, %c0_39] : memref<8x32xf32, #tpu.memory_space<vmem>>, vector<1x32xf32>
    %cst_40 = arith.constant dense<0.000000e+00> : vector<8x32xf32>
    %99 = tpu.matmul %96, %14, %cst_40 {dimension_numbers = #tpu.dot_dimension_numbers<[1], [0], [0], [1], [0, 0, 1, 1], [], []>} : vector<8x32xf32>, vector<32x32xf32>, vector<8x32xf32> -> vector<8x32xf32>
    %100 = vector.broadcast %98 : vector<1x32xf32> to vector<8x32xf32>
    %101 = arith.addf %100, %99 : vector<8x32xf32>
    %102 = arith.negf %101 : vector<8x32xf32>
    %103 = math.exp %102 : vector<8x32xf32>
    %cst_41 = arith.constant 1.000000e+00 : f32
    %104 = vector.broadcast %cst_41 : f32 to vector<8x32xf32>
    %105 = arith.addf %104, %103 : vector<8x32xf32>
    %106 = arith.divf %104, %105 : vector<8x32xf32>
    %107 = arith.index_cast %c1_i32 : i32 to index
    %108 = memref.load %arg1[%107] : memref<8xi32, #tpu.memory_space<smem>>
    %109 = vector.broadcast %108 : i32 to vector<8x32xi32>
    %110 = arith.cmpi slt, %15, %109 : vector<8x32xi32>
    %111 = math.exp %106 : vector<8x32xf32>
    %cst_42 = arith.constant 0.000000e+00 : f32
    %112 = vector.broadcast %cst_42 : f32 to vector<8x32xf32>
    %113 = arith.select %110, %111, %112 : vector<8x32xi1>, vector<8x32xf32>
    %114 = math.exp %85 : vector<1x32xf32>
    %cst_43 = arith.constant dense<0.000000e+00> : vector<32xf32>
    %115 = vector.multi_reduction <add>, %113, %cst_43 [0] : vector<8x32xf32> to vector<32xf32>
    %116 = vector.shape_cast %115 : vector<32xf32> to vector<1x32xf32>
    %117 = arith.addf %114, %116 : vector<1x32xf32>
    %118 = tpu.reciprocal %117 : vector<1x32xf32> -> vector<1x32xf32>
    %119 = arith.mulf %89, %114 : vector<1x32xf32>
    %120 = arith.mulf %96, %113 : vector<8x32xf32>
    %cst_44 = arith.constant dense<0.000000e+00> : vector<32xf32>
    %121 = vector.multi_reduction <add>, %120, %cst_44 [0] : vector<8x32xf32> to vector<32xf32>
    %122 = vector.shape_cast %121 : vector<32xf32> to vector<1x32xf32>
    %123 = arith.addf %119, %122 : vector<1x32xf32>
    %124 = arith.mulf %123, %118 : vector<1x32xf32>
    %c0_i32_45 = arith.constant 0 : i32
    %125 = arith.cmpi eq, %108, %c0_i32_45 : i32
    %126 = arith.select %125, %92, %124 : vector<1x32xf32>
    %127 = math.tanh %126 : vector<1x32xf32>
    %128 = arith.mulf %87, %127 : vector<1x32xf32>
    %129 = tpu.concatenate %128, %126 in 1 : vector<1x32xf32>, vector<1x32xf32> -> vector<1x64xf32>
    %130 = arith.index_cast %c1_i32 : i32 to index
    %c0_46 = arith.constant 0 : index
    %131 = vector.load %arg12[%130, %c0_46] : memref<8x64xf32, #tpu.memory_space<vmem>>, vector<1x64xf32>
    tpu.vector_store %arg12[%130, %c0_46], %129 {strides = array<i32>} : memref<8x64xf32, #tpu.memory_space<vmem>>, vector<1x64xf32>,
    %c2_i32 = arith.constant 2 : i32
    %cst_47 = arith.constant dense<0.000000e+00> : vector<1x128xf32>
    %132 = tpu.matmul %128, %13, %cst_47 {dimension_numbers = #tpu.dot_dimension_numbers<[1], [0], [0], [1], [0, 0, 1, 1], [], []>} : vector<1x32xf32>, vector<32x128xf32>, vector<1x128xf32> -> vector<1x128xf32>
    %133 = arith.index_cast %c2_i32 : i32 to index
    %c0_48 = arith.constant 0 : index
    %134 = vector.load %arg13[%133, %c0_48] : memref<8x128xf32, #tpu.memory_space<vmem>>, vector<1x128xf32>
    %135 = arith.addf %132, %134 : vector<1x128xf32>
    %136 = vector.extract_strided_slice %135 {offsets = [0, 0], sizes = [1, 96], strides = [1, 1]} : vector<1x128xf32> to vector<1x96xf32>
    %137 = arith.negf %136 : vector<1x96xf32>
    %138 = math.exp %137 : vector<1x96xf32>
    %cst_49 = arith.constant 1.000000e+00 : f32
    %139 = vector.broadcast %cst_49 : f32 to vector<1x96xf32>
    %140 = arith.addf %139, %138 : vector<1x96xf32>
    %141 = arith.divf %139, %140 : vector<1x96xf32>
    %142 = vector.extract_strided_slice %141 {offsets = [0, 0], sizes = [1, 32], strides = [1, 1]} : vector<1x96xf32> to vector<1x32xf32>
    %143 = vector.extract_strided_slice %141 {offsets = [0, 32], sizes = [1, 32], strides = [1, 1]} : vector<1x96xf32> to vector<1x32xf32>
    %144 = vector.extract_strided_slice %141 {offsets = [0, 64], sizes = [1, 32], strides = [1, 1]} : vector<1x96xf32> to vector<1x32xf32>
    %145 = vector.extract_strided_slice %135 {offsets = [0, 96], sizes = [1, 32], strides = [1, 1]} : vector<1x128xf32> to vector<1x32xf32>
    %146 = math.tanh %145 : vector<1x32xf32>
    %147 = arith.mulf %143, %126 : vector<1x32xf32>
    %148 = arith.mulf %142, %146 : vector<1x32xf32>
    %149 = arith.addf %147, %148 : vector<1x32xf32>
    %c8_i32_50 = arith.constant 8 : i32
    %150 = arith.muli %c2_i32, %c8_i32_50 : i32
    %151 = tpu.assume_multiple %150, 8 : i32
    %152 = arith.index_cast %151 : i32 to index
    %c0_51 = arith.constant 0 : index
    %153 = vector.load %arg3[%152, %c0_51] : memref<64x32xf32, #tpu.memory_space<vmem>>, vector<8x32xf32>
    %154 = arith.index_cast %c2_i32 : i32 to index
    %c0_52 = arith.constant 0 : index
    %155 = vector.load %arg14[%154, %c0_52] : memref<8x32xf32, #tpu.memory_space<vmem>>, vector<1x32xf32>
    %cst_53 = arith.constant dense<0.000000e+00> : vector<8x32xf32>
    %156 = tpu.matmul %153, %14, %cst_53 {dimension_numbers = #tpu.dot_dimension_numbers<[1], [0], [0], [1], [0, 0, 1, 1], [], []>} : vector<8x32xf32>, vector<32x32xf32>, vector<8x32xf32> -> vector<8x32xf32>
    %157 = vector.broadcast %155 : vector<1x32xf32> to vector<8x32xf32>
    %158 = arith.addf %157, %156 : vector<8x32xf32>
    %159 = arith.negf %158 : vector<8x32xf32>
    %160 = math.exp %159 : vector<8x32xf32>
    %cst_54 = arith.constant 1.000000e+00 : f32
    %161 = vector.broadcast %cst_54 : f32 to vector<8x32xf32>
    %162 = arith.addf %161, %160 : vector<8x32xf32>
    %163 = arith.divf %161, %162 : vector<8x32xf32>
    %164 = arith.index_cast %c2_i32 : i32 to index
    %165 = memref.load %arg1[%164] : memref<8xi32, #tpu.memory_space<smem>>
    %166 = vector.broadcast %165 : i32 to vector<8x32xi32>
    %167 = arith.cmpi slt, %15, %166 : vector<8x32xi32>
    %168 = math.exp %163 : vector<8x32xf32>
    %cst_55 = arith.constant 0.000000e+00 : f32
    %169 = vector.broadcast %cst_55 : f32 to vector<8x32xf32>
    %170 = arith.select %167, %168, %169 : vector<8x32xi1>, vector<8x32xf32>
    %171 = math.exp %142 : vector<1x32xf32>
    %cst_56 = arith.constant dense<0.000000e+00> : vector<32xf32>
    %172 = vector.multi_reduction <add>, %170, %cst_56 [0] : vector<8x32xf32> to vector<32xf32>
    %173 = vector.shape_cast %172 : vector<32xf32> to vector<1x32xf32>
    %174 = arith.addf %171, %173 : vector<1x32xf32>
    %175 = tpu.reciprocal %174 : vector<1x32xf32> -> vector<1x32xf32>
    %176 = arith.mulf %146, %171 : vector<1x32xf32>
    %177 = arith.mulf %153, %170 : vector<8x32xf32>
    %cst_57 = arith.constant dense<0.000000e+00> : vector<32xf32>
    %178 = vector.multi_reduction <add>, %177, %cst_57 [0] : vector<8x32xf32> to vector<32xf32>
    %179 = vector.shape_cast %178 : vector<32xf32> to vector<1x32xf32>
    %180 = arith.addf %176, %179 : vector<1x32xf32>
    %181 = arith.mulf %180, %175 : vector<1x32xf32>
    %c0_i32_58 = arith.constant 0 : i32
    %182 = arith.cmpi eq, %165, %c0_i32_58 : i32
    %183 = arith.select %182, %149, %181 : vector<1x32xf32>
    %184 = math.tanh %183 : vector<1x32xf32>
    %185 = arith.mulf %144, %184 : vector<1x32xf32>
    %186 = tpu.concatenate %185, %183 in 1 : vector<1x32xf32>, vector<1x32xf32> -> vector<1x64xf32>
    %187 = arith.index_cast %c2_i32 : i32 to index
    %c0_59 = arith.constant 0 : index
    %188 = vector.load %arg12[%187, %c0_59] : memref<8x64xf32, #tpu.memory_space<vmem>>, vector<1x64xf32>
    tpu.vector_store %arg12[%187, %c0_59], %186 {strides = array<i32>} : memref<8x64xf32, #tpu.memory_space<vmem>>, vector<1x64xf32>,
    %c3_i32 = arith.constant 3 : i32
    %cst_60 = arith.constant dense<0.000000e+00> : vector<1x128xf32>
    %189 = tpu.matmul %185, %13, %cst_60 {dimension_numbers = #tpu.dot_dimension_numbers<[1], [0], [0], [1], [0, 0, 1, 1], [], []>} : vector<1x32xf32>, vector<32x128xf32>, vector<1x128xf32> -> vector<1x128xf32>
    %190 = arith.index_cast %c3_i32 : i32 to index
    %c0_61 = arith.constant 0 : index
    %191 = vector.load %arg13[%190, %c0_61] : memref<8x128xf32, #tpu.memory_space<vmem>>, vector<1x128xf32>
    %192 = arith.addf %189, %191 : vector<1x128xf32>
    %193 = vector.extract_strided_slice %192 {offsets = [0, 0], sizes = [1, 96], strides = [1, 1]} : vector<1x128xf32> to vector<1x96xf32>
    %194 = arith.negf %193 : vector<1x96xf32>
    %195 = math.exp %194 : vector<1x96xf32>
    %cst_62 = arith.constant 1.000000e+00 : f32
    %196 = vector.broadcast %cst_62 : f32 to vector<1x96xf32>
    %197 = arith.addf %196, %195 : vector<1x96xf32>
    %198 = arith.divf %196, %197 : vector<1x96xf32>
    %199 = vector.extract_strided_slice %198 {offsets = [0, 0], sizes = [1, 32], strides = [1, 1]} : vector<1x96xf32> to vector<1x32xf32>
    %200 = vector.extract_strided_slice %198 {offsets = [0, 32], sizes = [1, 32], strides = [1, 1]} : vector<1x96xf32> to vector<1x32xf32>
    %201 = vector.extract_strided_slice %198 {offsets = [0, 64], sizes = [1, 32], strides = [1, 1]} : vector<1x96xf32> to vector<1x32xf32>
    %202 = vector.extract_strided_slice %192 {offsets = [0, 96], sizes = [1, 32], strides = [1, 1]} : vector<1x128xf32> to vector<1x32xf32>
    %203 = math.tanh %202 : vector<1x32xf32>
    %204 = arith.mulf %200, %183 : vector<1x32xf32>
    %205 = arith.mulf %199, %203 : vector<1x32xf32>
    %206 = arith.addf %204, %205 : vector<1x32xf32>
    %c8_i32_63 = arith.constant 8 : i32
    %207 = arith.muli %c3_i32, %c8_i32_63 : i32
    %208 = tpu.assume_multiple %207, 8 : i32
    %209 = arith.index_cast %208 : i32 to index
    %c0_64 = arith.constant 0 : index
    %210 = vector.load %arg3[%209, %c0_64] : memref<64x32xf32, #tpu.memory_space<vmem>>, vector<8x32xf32>
    %211 = arith.index_cast %c3_i32 : i32 to index
    %c0_65 = arith.constant 0 : index
    %212 = vector.load %arg14[%211, %c0_65] : memref<8x32xf32, #tpu.memory_space<vmem>>, vector<1x32xf32>
    %cst_66 = arith.constant dense<0.000000e+00> : vector<8x32xf32>
    %213 = tpu.matmul %210, %14, %cst_66 {dimension_numbers = #tpu.dot_dimension_numbers<[1], [0], [0], [1], [0, 0, 1, 1], [], []>} : vector<8x32xf32>, vector<32x32xf32>, vector<8x32xf32> -> vector<8x32xf32>
    %214 = vector.broadcast %212 : vector<1x32xf32> to vector<8x32xf32>
    %215 = arith.addf %214, %213 : vector<8x32xf32>
    %216 = arith.negf %215 : vector<8x32xf32>
    %217 = math.exp %216 : vector<8x32xf32>
    %cst_67 = arith.constant 1.000000e+00 : f32
    %218 = vector.broadcast %cst_67 : f32 to vector<8x32xf32>
    %219 = arith.addf %218, %217 : vector<8x32xf32>
    %220 = arith.divf %218, %219 : vector<8x32xf32>
    %221 = arith.index_cast %c3_i32 : i32 to index
    %222 = memref.load %arg1[%221] : memref<8xi32, #tpu.memory_space<smem>>
    %223 = vector.broadcast %222 : i32 to vector<8x32xi32>
    %224 = arith.cmpi slt, %15, %223 : vector<8x32xi32>
    %225 = math.exp %220 : vector<8x32xf32>
    %cst_68 = arith.constant 0.000000e+00 : f32
    %226 = vector.broadcast %cst_68 : f32 to vector<8x32xf32>
    %227 = arith.select %224, %225, %226 : vector<8x32xi1>, vector<8x32xf32>
    %228 = math.exp %199 : vector<1x32xf32>
    %cst_69 = arith.constant dense<0.000000e+00> : vector<32xf32>
    %229 = vector.multi_reduction <add>, %227, %cst_69 [0] : vector<8x32xf32> to vector<32xf32>
    %230 = vector.shape_cast %229 : vector<32xf32> to vector<1x32xf32>
    %231 = arith.addf %228, %230 : vector<1x32xf32>
    %232 = tpu.reciprocal %231 : vector<1x32xf32> -> vector<1x32xf32>
    %233 = arith.mulf %203, %228 : vector<1x32xf32>
    %234 = arith.mulf %210, %227 : vector<8x32xf32>
    %cst_70 = arith.constant dense<0.000000e+00> : vector<32xf32>
    %235 = vector.multi_reduction <add>, %234, %cst_70 [0] : vector<8x32xf32> to vector<32xf32>
    %236 = vector.shape_cast %235 : vector<32xf32> to vector<1x32xf32>
    %237 = arith.addf %233, %236 : vector<1x32xf32>
    %238 = arith.mulf %237, %232 : vector<1x32xf32>
    %c0_i32_71 = arith.constant 0 : i32
    %239 = arith.cmpi eq, %222, %c0_i32_71 : i32
    %240 = arith.select %239, %206, %238 : vector<1x32xf32>
    %241 = math.tanh %240 : vector<1x32xf32>
    %242 = arith.mulf %201, %241 : vector<1x32xf32>
    %243 = tpu.concatenate %242, %240 in 1 : vector<1x32xf32>, vector<1x32xf32> -> vector<1x64xf32>
    %244 = arith.index_cast %c3_i32 : i32 to index
    %c0_72 = arith.constant 0 : index
    %245 = vector.load %arg12[%244, %c0_72] : memref<8x64xf32, #tpu.memory_space<vmem>>, vector<1x64xf32>
    tpu.vector_store %arg12[%244, %c0_72], %243 {strides = array<i32>} : memref<8x64xf32, #tpu.memory_space<vmem>>, vector<1x64xf32>,
    %c4_i32 = arith.constant 4 : i32
    %cst_73 = arith.constant dense<0.000000e+00> : vector<1x128xf32>
    %246 = tpu.matmul %242, %13, %cst_73 {dimension_numbers = #tpu.dot_dimension_numbers<[1], [0], [0], [1], [0, 0, 1, 1], [], []>} : vector<1x32xf32>, vector<32x128xf32>, vector<1x128xf32> -> vector<1x128xf32>
    %247 = arith.index_cast %c4_i32 : i32 to index
    %c0_74 = arith.constant 0 : index
    %248 = vector.load %arg13[%247, %c0_74] : memref<8x128xf32, #tpu.memory_space<vmem>>, vector<1x128xf32>
    %249 = arith.addf %246, %248 : vector<1x128xf32>
    %250 = vector.extract_strided_slice %249 {offsets = [0, 0], sizes = [1, 96], strides = [1, 1]} : vector<1x128xf32> to vector<1x96xf32>
    %251 = arith.negf %250 : vector<1x96xf32>
    %252 = math.exp %251 : vector<1x96xf32>
    %cst_75 = arith.constant 1.000000e+00 : f32
    %253 = vector.broadcast %cst_75 : f32 to vector<1x96xf32>
    %254 = arith.addf %253, %252 : vector<1x96xf32>
    %255 = arith.divf %253, %254 : vector<1x96xf32>
    %256 = vector.extract_strided_slice %255 {offsets = [0, 0], sizes = [1, 32], strides = [1, 1]} : vector<1x96xf32> to vector<1x32xf32>
    %257 = vector.extract_strided_slice %255 {offsets = [0, 32], sizes = [1, 32], strides = [1, 1]} : vector<1x96xf32> to vector<1x32xf32>
    %258 = vector.extract_strided_slice %255 {offsets = [0, 64], sizes = [1, 32], strides = [1, 1]} : vector<1x96xf32> to vector<1x32xf32>
    %259 = vector.extract_strided_slice %249 {offsets = [0, 96], sizes = [1, 32], strides = [1, 1]} : vector<1x128xf32> to vector<1x32xf32>
    %260 = math.tanh %259 : vector<1x32xf32>
    %261 = arith.mulf %257, %240 : vector<1x32xf32>
    %262 = arith.mulf %256, %260 : vector<1x32xf32>
    %263 = arith.addf %261, %262 : vector<1x32xf32>
    %c8_i32_76 = arith.constant 8 : i32
    %264 = arith.muli %c4_i32, %c8_i32_76 : i32
    %265 = tpu.assume_multiple %264, 8 : i32
    %266 = arith.index_cast %265 : i32 to index
    %c0_77 = arith.constant 0 : index
    %267 = vector.load %arg3[%266, %c0_77] : memref<64x32xf32, #tpu.memory_space<vmem>>, vector<8x32xf32>
    %268 = arith.index_cast %c4_i32 : i32 to index
    %c0_78 = arith.constant 0 : index
    %269 = vector.load %arg14[%268, %c0_78] : memref<8x32xf32, #tpu.memory_space<vmem>>, vector<1x32xf32>
    %cst_79 = arith.constant dense<0.000000e+00> : vector<8x32xf32>
    %270 = tpu.matmul %267, %14, %cst_79 {dimension_numbers = #tpu.dot_dimension_numbers<[1], [0], [0], [1], [0, 0, 1, 1], [], []>} : vector<8x32xf32>, vector<32x32xf32>, vector<8x32xf32> -> vector<8x32xf32>
    %271 = vector.broadcast %269 : vector<1x32xf32> to vector<8x32xf32>
    %272 = arith.addf %271, %270 : vector<8x32xf32>
    %273 = arith.negf %272 : vector<8x32xf32>
    %274 = math.exp %273 : vector<8x32xf32>
    %cst_80 = arith.constant 1.000000e+00 : f32
    %275 = vector.broadcast %cst_80 : f32 to vector<8x32xf32>
    %276 = arith.addf %275, %274 : vector<8x32xf32>
    %277 = arith.divf %275, %276 : vector<8x32xf32>
    %278 = arith.index_cast %c4_i32 : i32 to index
    %279 = memref.load %arg1[%278] : memref<8xi32, #tpu.memory_space<smem>>
    %280 = vector.broadcast %279 : i32 to vector<8x32xi32>
    %281 = arith.cmpi slt, %15, %280 : vector<8x32xi32>
    %282 = math.exp %277 : vector<8x32xf32>
    %cst_81 = arith.constant 0.000000e+00 : f32
    %283 = vector.broadcast %cst_81 : f32 to vector<8x32xf32>
    %284 = arith.select %281, %282, %283 : vector<8x32xi1>, vector<8x32xf32>
    %285 = math.exp %256 : vector<1x32xf32>
    %cst_82 = arith.constant dense<0.000000e+00> : vector<32xf32>
    %286 = vector.multi_reduction <add>, %284, %cst_82 [0] : vector<8x32xf32> to vector<32xf32>
    %287 = vector.shape_cast %286 : vector<32xf32> to vector<1x32xf32>
    %288 = arith.addf %285, %287 : vector<1x32xf32>
    %289 = tpu.reciprocal %288 : vector<1x32xf32> -> vector<1x32xf32>
    %290 = arith.mulf %260, %285 : vector<1x32xf32>
    %291 = arith.mulf %267, %284 : vector<8x32xf32>
    %cst_83 = arith.constant dense<0.000000e+00> : vector<32xf32>
    %292 = vector.multi_reduction <add>, %291, %cst_83 [0] : vector<8x32xf32> to vector<32xf32>
    %293 = vector.shape_cast %292 : vector<32xf32> to vector<1x32xf32>
    %294 = arith.addf %290, %293 : vector<1x32xf32>
    %295 = arith.mulf %294, %289 : vector<1x32xf32>
    %c0_i32_84 = arith.constant 0 : i32
    %296 = arith.cmpi eq, %279, %c0_i32_84 : i32
    %297 = arith.select %296, %263, %295 : vector<1x32xf32>
    %298 = math.tanh %297 : vector<1x32xf32>
    %299 = arith.mulf %258, %298 : vector<1x32xf32>
    %300 = tpu.concatenate %299, %297 in 1 : vector<1x32xf32>, vector<1x32xf32> -> vector<1x64xf32>
    %301 = arith.index_cast %c4_i32 : i32 to index
    %c0_85 = arith.constant 0 : index
    %302 = vector.load %arg12[%301, %c0_85] : memref<8x64xf32, #tpu.memory_space<vmem>>, vector<1x64xf32>
    tpu.vector_store %arg12[%301, %c0_85], %300 {strides = array<i32>} : memref<8x64xf32, #tpu.memory_space<vmem>>, vector<1x64xf32>,
    %c5_i32 = arith.constant 5 : i32
    %cst_86 = arith.constant dense<0.000000e+00> : vector<1x128xf32>
    %303 = tpu.matmul %299, %13, %cst_86 {dimension_numbers = #tpu.dot_dimension_numbers<[1], [0], [0], [1], [0, 0, 1, 1], [], []>} : vector<1x32xf32>, vector<32x128xf32>, vector<1x128xf32> -> vector<1x128xf32>
    %304 = arith.index_cast %c5_i32 : i32 to index
    %c0_87 = arith.constant 0 : index
    %305 = vector.load %arg13[%304, %c0_87] : memref<8x128xf32, #tpu.memory_space<vmem>>, vector<1x128xf32>
    %306 = arith.addf %303, %305 : vector<1x128xf32>
    %307 = vector.extract_strided_slice %306 {offsets = [0, 0], sizes = [1, 96], strides = [1, 1]} : vector<1x128xf32> to vector<1x96xf32>
    %308 = arith.negf %307 : vector<1x96xf32>
    %309 = math.exp %308 : vector<1x96xf32>
    %cst_88 = arith.constant 1.000000e+00 : f32
    %310 = vector.broadcast %cst_88 : f32 to vector<1x96xf32>
    %311 = arith.addf %310, %309 : vector<1x96xf32>
    %312 = arith.divf %310, %311 : vector<1x96xf32>
    %313 = vector.extract_strided_slice %312 {offsets = [0, 0], sizes = [1, 32], strides = [1, 1]} : vector<1x96xf32> to vector<1x32xf32>
    %314 = vector.extract_strided_slice %312 {offsets = [0, 32], sizes = [1, 32], strides = [1, 1]} : vector<1x96xf32> to vector<1x32xf32>
    %315 = vector.extract_strided_slice %312 {offsets = [0, 64], sizes = [1, 32], strides = [1, 1]} : vector<1x96xf32> to vector<1x32xf32>
    %316 = vector.extract_strided_slice %306 {offsets = [0, 96], sizes = [1, 32], strides = [1, 1]} : vector<1x128xf32> to vector<1x32xf32>
    %317 = math.tanh %316 : vector<1x32xf32>
    %318 = arith.mulf %314, %297 : vector<1x32xf32>
    %319 = arith.mulf %313, %317 : vector<1x32xf32>
    %320 = arith.addf %318, %319 : vector<1x32xf32>
    %c8_i32_89 = arith.constant 8 : i32
    %321 = arith.muli %c5_i32, %c8_i32_89 : i32
    %322 = tpu.assume_multiple %321, 8 : i32
    %323 = arith.index_cast %322 : i32 to index
    %c0_90 = arith.constant 0 : index
    %324 = vector.load %arg3[%323, %c0_90] : memref<64x32xf32, #tpu.memory_space<vmem>>, vector<8x32xf32>
    %325 = arith.index_cast %c5_i32 : i32 to index
    %c0_91 = arith.constant 0 : index
    %326 = vector.load %arg14[%325, %c0_91] : memref<8x32xf32, #tpu.memory_space<vmem>>, vector<1x32xf32>
    %cst_92 = arith.constant dense<0.000000e+00> : vector<8x32xf32>
    %327 = tpu.matmul %324, %14, %cst_92 {dimension_numbers = #tpu.dot_dimension_numbers<[1], [0], [0], [1], [0, 0, 1, 1], [], []>} : vector<8x32xf32>, vector<32x32xf32>, vector<8x32xf32> -> vector<8x32xf32>
    %328 = vector.broadcast %326 : vector<1x32xf32> to vector<8x32xf32>
    %329 = arith.addf %328, %327 : vector<8x32xf32>
    %330 = arith.negf %329 : vector<8x32xf32>
    %331 = math.exp %330 : vector<8x32xf32>
    %cst_93 = arith.constant 1.000000e+00 : f32
    %332 = vector.broadcast %cst_93 : f32 to vector<8x32xf32>
    %333 = arith.addf %332, %331 : vector<8x32xf32>
    %334 = arith.divf %332, %333 : vector<8x32xf32>
    %335 = arith.index_cast %c5_i32 : i32 to index
    %336 = memref.load %arg1[%335] : memref<8xi32, #tpu.memory_space<smem>>
    %337 = vector.broadcast %336 : i32 to vector<8x32xi32>
    %338 = arith.cmpi slt, %15, %337 : vector<8x32xi32>
    %339 = math.exp %334 : vector<8x32xf32>
    %cst_94 = arith.constant 0.000000e+00 : f32
    %340 = vector.broadcast %cst_94 : f32 to vector<8x32xf32>
    %341 = arith.select %338, %339, %340 : vector<8x32xi1>, vector<8x32xf32>
    %342 = math.exp %313 : vector<1x32xf32>
    %cst_95 = arith.constant dense<0.000000e+00> : vector<32xf32>
    %343 = vector.multi_reduction <add>, %341, %cst_95 [0] : vector<8x32xf32> to vector<32xf32>
    %344 = vector.shape_cast %343 : vector<32xf32> to vector<1x32xf32>
    %345 = arith.addf %342, %344 : vector<1x32xf32>
    %346 = tpu.reciprocal %345 : vector<1x32xf32> -> vector<1x32xf32>
    %347 = arith.mulf %317, %342 : vector<1x32xf32>
    %348 = arith.mulf %324, %341 : vector<8x32xf32>
    %cst_96 = arith.constant dense<0.000000e+00> : vector<32xf32>
    %349 = vector.multi_reduction <add>, %348, %cst_96 [0] : vector<8x32xf32> to vector<32xf32>
    %350 = vector.shape_cast %349 : vector<32xf32> to vector<1x32xf32>
    %351 = arith.addf %347, %350 : vector<1x32xf32>
    %352 = arith.mulf %351, %346 : vector<1x32xf32>
    %c0_i32_97 = arith.constant 0 : i32
    %353 = arith.cmpi eq, %336, %c0_i32_97 : i32
    %354 = arith.select %353, %320, %352 : vector<1x32xf32>
    %355 = math.tanh %354 : vector<1x32xf32>
    %356 = arith.mulf %315, %355 : vector<1x32xf32>
    %357 = tpu.concatenate %356, %354 in 1 : vector<1x32xf32>, vector<1x32xf32> -> vector<1x64xf32>
    %358 = arith.index_cast %c5_i32 : i32 to index
    %c0_98 = arith.constant 0 : index
    %359 = vector.load %arg12[%358, %c0_98] : memref<8x64xf32, #tpu.memory_space<vmem>>, vector<1x64xf32>
    tpu.vector_store %arg12[%358, %c0_98], %357 {strides = array<i32>} : memref<8x64xf32, #tpu.memory_space<vmem>>, vector<1x64xf32>,
    %c6_i32 = arith.constant 6 : i32
    %cst_99 = arith.constant dense<0.000000e+00> : vector<1x128xf32>
    %360 = tpu.matmul %356, %13, %cst_99 {dimension_numbers = #tpu.dot_dimension_numbers<[1], [0], [0], [1], [0, 0, 1, 1], [], []>} : vector<1x32xf32>, vector<32x128xf32>, vector<1x128xf32> -> vector<1x128xf32>
    %361 = arith.index_cast %c6_i32 : i32 to index
    %c0_100 = arith.constant 0 : index
    %362 = vector.load %arg13[%361, %c0_100] : memref<8x128xf32, #tpu.memory_space<vmem>>, vector<1x128xf32>
    %363 = arith.addf %360, %362 : vector<1x128xf32>
    %364 = vector.extract_strided_slice %363 {offsets = [0, 0], sizes = [1, 96], strides = [1, 1]} : vector<1x128xf32> to vector<1x96xf32>
    %365 = arith.negf %364 : vector<1x96xf32>
    %366 = math.exp %365 : vector<1x96xf32>
    %cst_101 = arith.constant 1.000000e+00 : f32
    %367 = vector.broadcast %cst_101 : f32 to vector<1x96xf32>
    %368 = arith.addf %367, %366 : vector<1x96xf32>
    %369 = arith.divf %367, %368 : vector<1x96xf32>
    %370 = vector.extract_strided_slice %369 {offsets = [0, 0], sizes = [1, 32], strides = [1, 1]} : vector<1x96xf32> to vector<1x32xf32>
    %371 = vector.extract_strided_slice %369 {offsets = [0, 32], sizes = [1, 32], strides = [1, 1]} : vector<1x96xf32> to vector<1x32xf32>
    %372 = vector.extract_strided_slice %369 {offsets = [0, 64], sizes = [1, 32], strides = [1, 1]} : vector<1x96xf32> to vector<1x32xf32>
    %373 = vector.extract_strided_slice %363 {offsets = [0, 96], sizes = [1, 32], strides = [1, 1]} : vector<1x128xf32> to vector<1x32xf32>
    %374 = math.tanh %373 : vector<1x32xf32>
    %375 = arith.mulf %371, %354 : vector<1x32xf32>
    %376 = arith.mulf %370, %374 : vector<1x32xf32>
    %377 = arith.addf %375, %376 : vector<1x32xf32>
    %c8_i32_102 = arith.constant 8 : i32
    %378 = arith.muli %c6_i32, %c8_i32_102 : i32
    %379 = tpu.assume_multiple %378, 8 : i32
    %380 = arith.index_cast %379 : i32 to index
    %c0_103 = arith.constant 0 : index
    %381 = vector.load %arg3[%380, %c0_103] : memref<64x32xf32, #tpu.memory_space<vmem>>, vector<8x32xf32>
    %382 = arith.index_cast %c6_i32 : i32 to index
    %c0_104 = arith.constant 0 : index
    %383 = vector.load %arg14[%382, %c0_104] : memref<8x32xf32, #tpu.memory_space<vmem>>, vector<1x32xf32>
    %cst_105 = arith.constant dense<0.000000e+00> : vector<8x32xf32>
    %384 = tpu.matmul %381, %14, %cst_105 {dimension_numbers = #tpu.dot_dimension_numbers<[1], [0], [0], [1], [0, 0, 1, 1], [], []>} : vector<8x32xf32>, vector<32x32xf32>, vector<8x32xf32> -> vector<8x32xf32>
    %385 = vector.broadcast %383 : vector<1x32xf32> to vector<8x32xf32>
    %386 = arith.addf %385, %384 : vector<8x32xf32>
    %387 = arith.negf %386 : vector<8x32xf32>
    %388 = math.exp %387 : vector<8x32xf32>
    %cst_106 = arith.constant 1.000000e+00 : f32
    %389 = vector.broadcast %cst_106 : f32 to vector<8x32xf32>
    %390 = arith.addf %389, %388 : vector<8x32xf32>
    %391 = arith.divf %389, %390 : vector<8x32xf32>
    %392 = arith.index_cast %c6_i32 : i32 to index
    %393 = memref.load %arg1[%392] : memref<8xi32, #tpu.memory_space<smem>>
    %394 = vector.broadcast %393 : i32 to vector<8x32xi32>
    %395 = arith.cmpi slt, %15, %394 : vector<8x32xi32>
    %396 = math.exp %391 : vector<8x32xf32>
    %cst_107 = arith.constant 0.000000e+00 : f32
    %397 = vector.broadcast %cst_107 : f32 to vector<8x32xf32>
    %398 = arith.select %395, %396, %397 : vector<8x32xi1>, vector<8x32xf32>
    %399 = math.exp %370 : vector<1x32xf32>
    %cst_108 = arith.constant dense<0.000000e+00> : vector<32xf32>
    %400 = vector.multi_reduction <add>, %398, %cst_108 [0] : vector<8x32xf32> to vector<32xf32>
    %401 = vector.shape_cast %400 : vector<32xf32> to vector<1x32xf32>
    %402 = arith.addf %399, %401 : vector<1x32xf32>
    %403 = tpu.reciprocal %402 : vector<1x32xf32> -> vector<1x32xf32>
    %404 = arith.mulf %374, %399 : vector<1x32xf32>
    %405 = arith.mulf %381, %398 : vector<8x32xf32>
    %cst_109 = arith.constant dense<0.000000e+00> : vector<32xf32>
    %406 = vector.multi_reduction <add>, %405, %cst_109 [0] : vector<8x32xf32> to vector<32xf32>
    %407 = vector.shape_cast %406 : vector<32xf32> to vector<1x32xf32>
    %408 = arith.addf %404, %407 : vector<1x32xf32>
    %409 = arith.mulf %408, %403 : vector<1x32xf32>
    %c0_i32_110 = arith.constant 0 : i32
    %410 = arith.cmpi eq, %393, %c0_i32_110 : i32
    %411 = arith.select %410, %377, %409 : vector<1x32xf32>
    %412 = math.tanh %411 : vector<1x32xf32>
    %413 = arith.mulf %372, %412 : vector<1x32xf32>
    %414 = tpu.concatenate %413, %411 in 1 : vector<1x32xf32>, vector<1x32xf32> -> vector<1x64xf32>
    %415 = arith.index_cast %c6_i32 : i32 to index
    %c0_111 = arith.constant 0 : index
    %416 = vector.load %arg12[%415, %c0_111] : memref<8x64xf32, #tpu.memory_space<vmem>>, vector<1x64xf32>
    tpu.vector_store %arg12[%415, %c0_111], %414 {strides = array<i32>} : memref<8x64xf32, #tpu.memory_space<vmem>>, vector<1x64xf32>,
    %c7_i32 = arith.constant 7 : i32
    %cst_112 = arith.constant dense<0.000000e+00> : vector<1x128xf32>
    %417 = tpu.matmul %413, %13, %cst_112 {dimension_numbers = #tpu.dot_dimension_numbers<[1], [0], [0], [1], [0, 0, 1, 1], [], []>} : vector<1x32xf32>, vector<32x128xf32>, vector<1x128xf32> -> vector<1x128xf32>
    %418 = arith.index_cast %c7_i32 : i32 to index
    %c0_113 = arith.constant 0 : index
    %419 = vector.load %arg13[%418, %c0_113] : memref<8x128xf32, #tpu.memory_space<vmem>>, vector<1x128xf32>
    %420 = arith.addf %417, %419 : vector<1x128xf32>
    %421 = vector.extract_strided_slice %420 {offsets = [0, 0], sizes = [1, 96], strides = [1, 1]} : vector<1x128xf32> to vector<1x96xf32>
    %422 = arith.negf %421 : vector<1x96xf32>
    %423 = math.exp %422 : vector<1x96xf32>
    %cst_114 = arith.constant 1.000000e+00 : f32
    %424 = vector.broadcast %cst_114 : f32 to vector<1x96xf32>
    %425 = arith.addf %424, %423 : vector<1x96xf32>
    %426 = arith.divf %424, %425 : vector<1x96xf32>
    %427 = vector.extract_strided_slice %426 {offsets = [0, 0], sizes = [1, 32], strides = [1, 1]} : vector<1x96xf32> to vector<1x32xf32>
    %428 = vector.extract_strided_slice %426 {offsets = [0, 32], sizes = [1, 32], strides = [1, 1]} : vector<1x96xf32> to vector<1x32xf32>
    %429 = vector.extract_strided_slice %426 {offsets = [0, 64], sizes = [1, 32], strides = [1, 1]} : vector<1x96xf32> to vector<1x32xf32>
    %430 = vector.extract_strided_slice %420 {offsets = [0, 96], sizes = [1, 32], strides = [1, 1]} : vector<1x128xf32> to vector<1x32xf32>
    %431 = math.tanh %430 : vector<1x32xf32>
    %432 = arith.mulf %428, %411 : vector<1x32xf32>
    %433 = arith.mulf %427, %431 : vector<1x32xf32>
    %434 = arith.addf %432, %433 : vector<1x32xf32>
    %c8_i32_115 = arith.constant 8 : i32
    %435 = arith.muli %c7_i32, %c8_i32_115 : i32
    %436 = tpu.assume_multiple %435, 8 : i32
    %437 = arith.index_cast %436 : i32 to index
    %c0_116 = arith.constant 0 : index
    %438 = vector.load %arg3[%437, %c0_116] : memref<64x32xf32, #tpu.memory_space<vmem>>, vector<8x32xf32>
    %439 = arith.index_cast %c7_i32 : i32 to index
    %c0_117 = arith.constant 0 : index
    %440 = vector.load %arg14[%439, %c0_117] : memref<8x32xf32, #tpu.memory_space<vmem>>, vector<1x32xf32>
    %cst_118 = arith.constant dense<0.000000e+00> : vector<8x32xf32>
    %441 = tpu.matmul %438, %14, %cst_118 {dimension_numbers = #tpu.dot_dimension_numbers<[1], [0], [0], [1], [0, 0, 1, 1], [], []>} : vector<8x32xf32>, vector<32x32xf32>, vector<8x32xf32> -> vector<8x32xf32>
    %442 = vector.broadcast %440 : vector<1x32xf32> to vector<8x32xf32>
    %443 = arith.addf %442, %441 : vector<8x32xf32>
    %444 = arith.negf %443 : vector<8x32xf32>
    %445 = math.exp %444 : vector<8x32xf32>
    %cst_119 = arith.constant 1.000000e+00 : f32
    %446 = vector.broadcast %cst_119 : f32 to vector<8x32xf32>
    %447 = arith.addf %446, %445 : vector<8x32xf32>
    %448 = arith.divf %446, %447 : vector<8x32xf32>
    %449 = arith.index_cast %c7_i32 : i32 to index
    %450 = memref.load %arg1[%449] : memref<8xi32, #tpu.memory_space<smem>>
    %451 = vector.broadcast %450 : i32 to vector<8x32xi32>
    %452 = arith.cmpi slt, %15, %451 : vector<8x32xi32>
    %453 = math.exp %448 : vector<8x32xf32>
    %cst_120 = arith.constant 0.000000e+00 : f32
    %454 = vector.broadcast %cst_120 : f32 to vector<8x32xf32>
    %455 = arith.select %452, %453, %454 : vector<8x32xi1>, vector<8x32xf32>
    %456 = math.exp %427 : vector<1x32xf32>
    %cst_121 = arith.constant dense<0.000000e+00> : vector<32xf32>
    %457 = vector.multi_reduction <add>, %455, %cst_121 [0] : vector<8x32xf32> to vector<32xf32>
    %458 = vector.shape_cast %457 : vector<32xf32> to vector<1x32xf32>
    %459 = arith.addf %456, %458 : vector<1x32xf32>
    %460 = tpu.reciprocal %459 : vector<1x32xf32> -> vector<1x32xf32>
    %461 = arith.mulf %431, %456 : vector<1x32xf32>
    %462 = arith.mulf %438, %455 : vector<8x32xf32>
    %cst_122 = arith.constant dense<0.000000e+00> : vector<32xf32>
    %463 = vector.multi_reduction <add>, %462, %cst_122 [0] : vector<8x32xf32> to vector<32xf32>
    %464 = vector.shape_cast %463 : vector<32xf32> to vector<1x32xf32>
    %465 = arith.addf %461, %464 : vector<1x32xf32>
    %466 = arith.mulf %465, %460 : vector<1x32xf32>
    %c0_i32_123 = arith.constant 0 : i32
    %467 = arith.cmpi eq, %450, %c0_i32_123 : i32
    %468 = arith.select %467, %434, %466 : vector<1x32xf32>
    %469 = math.tanh %468 : vector<1x32xf32>
    %470 = arith.mulf %429, %469 : vector<1x32xf32>
    %471 = tpu.concatenate %470, %468 in 1 : vector<1x32xf32>, vector<1x32xf32> -> vector<1x64xf32>
    %472 = arith.index_cast %c7_i32 : i32 to index
    %c0_124 = arith.constant 0 : index
    %473 = vector.load %arg12[%472, %c0_124] : memref<8x64xf32, #tpu.memory_space<vmem>>, vector<1x64xf32>
    tpu.vector_store %arg12[%472, %c0_124], %471 {strides = array<i32>} : memref<8x64xf32, #tpu.memory_space<vmem>>, vector<1x64xf32>,
    %c8_i32_125 = arith.constant 8 : i32
    return
  }
  func.func @transform_0(%arg0: i32, %arg1: memref<8xi32, #tpu.memory_space<smem>>) -> (i32, i32) {
    %c0_i32 = arith.constant 0 : i32
    %c0_i32_0 = arith.constant 0 : i32
    %c0_i32_1 = arith.constant 0 : i32
    return %c0_i32, %c0_i32_0 : i32, i32
  }
  func.func @transform_1(%arg0: i32, %arg1: memref<8xi32, #tpu.memory_space<smem>>) -> (i32, i32) {
    %c0_i32 = arith.constant 0 : i32
    %c0_i32_0 = arith.constant 0 : i32
    %c0_i32_1 = arith.constant 0 : i32
    return %c0_i32, %c0_i32_0 : i32, i32
  }
  func.func @transform_2(%arg0: i32, %arg1: memref<8xi32, #tpu.memory_space<smem>>) -> (i32, i32) {
    %c0_i32 = arith.constant 0 : i32
    %c0_i32_0 = arith.constant 0 : i32
    %c0_i32_1 = arith.constant 0 : i32
    return %c0_i32, %c0_i32_0 : i32, i32
  }
  func.func @transform_3(%arg0: i32, %arg1: memref<8xi32, #tpu.memory_space<smem>>) -> (i32, i32) {
    %c0_i32 = arith.constant 0 : i32
    %c0_i32_0 = arith.constant 0 : i32
    %c0_i32_1 = arith.constant 0 : i32
    return %c0_i32, %c0_i32_0 : i32, i32
  }
  func.func @transform_4(%arg0: i32, %arg1: memref<8xi32, #tpu.memory_space<smem>>) -> (i32, i32) {
    %c0_i32 = arith.constant 0 : i32
    %c0_i32_0 = arith.constant 0 : i32
    %c0_i32_1 = arith.constant 0 : i32
    return %c0_i32, %c0_i32_0 : i32, i32
  }
  func.func @transform_5(%arg0: i32, %arg1: memref<8xi32, #tpu.memory_space<smem>>) -> (i32, i32) {
    %c0_i32 = arith.constant 0 : i32
    %c0_i32_0 = arith.constant 0 : i32
    %c0_i32_1 = arith.constant 0 : i32
    return %c0_i32, %c0_i32_0 : i32, i32
  }
  func.func @transform_6(%arg0: i32, %arg1: memref<8xi32, #tpu.memory_space<smem>>) -> (i32, i32) {
    %c0_i32 = arith.constant 0 : i32
    %c0_i32_0 = arith.constant 0 : i32
    %c0_i32_1 = arith.constant 0 : i32
    return %c0_i32, %c0_i32_0 : i32, i32
  }
  func.func @transform_7(%arg0: i32, %arg1: memref<8xi32, #tpu.memory_space<smem>>) -> (i32, i32) {
    %c0_i32 = arith.constant 0 : i32
    %c0_i32_0 = arith.constant 0 : i32
    %c0_i32_1 = arith.constant 0 : i32
    return %c0_i32, %c0_i32_0 : i32, i32
  }
  func.func @transform_8(%arg0: i32, %arg1: memref<8xi32, #tpu.memory_space<smem>>) -> (i32, i32) {
    %c0_i32 = arith.constant 0 : i32
    %c0_i32_0 = arith.constant 0 : i32
    %c0_i32_1 = arith.constant 0 : i32
    return %c0_i32, %c0_i32_0 : i32, i32
  }
  func.func @transform_9(%arg0: i32, %arg1: memref<8xi32, #tpu.memory_space<smem>>) -> (i32, i32) {
    %c0_i32 = arith.constant 0 : i32
    %c0_i32_0 = arith.constant 0 : i32
    %c0_i32_1 = arith.constant 0 : i32
    return %c0_i32, %c0_i32_0 : i32, i32
  }
  func.func @transform_10(%arg0: i32, %arg1: memref<8xi32, #tpu.memory_space<smem>>) -> (i32, i32) {
    %c0_i32 = arith.constant 0 : i32
    %c0_i32_0 = arith.constant 0 : i32
    %c0_i32_1 = arith.constant 0 : i32
    return %c0_i32, %c0_i32_0 : i32, i32
  }
}

</mosaic_0001>

<bundles_post_ra>
// kernel: tpu_custom_call.1
= control target key start
LH: loop header
LB: loop body
LE: loop exit
PB: predicated region body
PF: predicated region fallthrough
CT: control target
= control target key end

     0   :  { %s1884_s20 = smov [#allocation5]   ;;  %s2384_s0 = inlined_call_operand.hbm [shape: s32[8], index: 0, kind: input, shape index: {}]   ;;  %s2385_s1 = inlined_call_operand.hbm [shape: f32[8,32], index: 1, kind: input, shape index: {}]   ;;  %s2386_s2 = inlined_call_operand.vmem [shape: f32[64,32], index: 2, kind: input, shape index: {}]   ;;  %s2387_s3 = inlined_call_operand.vmem [shape: f32[1,32], index: 3, kind: input, shape index: {}]   ;;  %s2388_s4 = inlined_call_operand.vmem [shape: f32[1,32], index: 4, kind: input, shape index: {}]   ;;  %s2389_s5 = inlined_call_operand.vmem [shape: f32[32,128], index: 5, kind: input, shape index: {}]   ;;  %s2390_s6 = inlined_call_operand.vmem [shape: f32[1,128], index: 6, kind: input, shape index: {}]   ;;  %s2391_s7 = inlined_call_operand.vmem [shape: f32[32,128], index: 7, kind: input, shape index: {}]   ;;  %s2392_s8 = inlined_call_operand.vmem [shape: f32[32,32], index: 8, kind: input, shape index: {}]   ;;  %s2393_s9 = inlined_call_operand.vmem [shape: f32[1,32], index: 9, kind: input, shape index: {}]   ;;  %s2394_s10 = inlined_call_operand.hbm [shape: f32[32,32], index: 10, kind: input, shape index: {}]   ;;  %s2395_s11 = inlined_call_operand.hbm [shape: f32[8,64], index: 11, kind: output, shape index: {}]  }
   0x1   :  { %s17_s19 = sshll.u32 %s2384_s0, 4  ;;  %s18_s19 = int_to_ptr.hbm [resolvable:$true] %s17_s19 }
   0x2   :  { %20 = dma.hbm_to_smem %s18_s19, 16, %s1884_s20, [#allocation4] }
   0x3   :  { %1876 = dma.done.wait [#allocation4], 16 }
   0x4   :  { %1877 = vsyncadd [#allocation4], 4294967280 }
   0x5   :  { %23 = sfence }
   0x6   :  { %24 = vsyncpa [#allocation7], 0 }
   0x7   :  { %25 = vsyncpa [#allocation10], 0 }
   0x8   :  { %26 = vsyncpa [#allocation8], 0  ;;  %s32_s23 = sshll.u32 %s2385_s1, 4  ;;  %s1885_s24 = smov [#allocation6]   ;;  %s33_s23 = int_to_ptr.hbm [resolvable:$true] %s32_s23 }
   0x9   :  { %s34_s25 = sshll.u32 %s1885_s24, 4  ;;  %s58_s0 = sshll.u32 %s2394_s10, 4  ;;  %s35_s25 = int_to_ptr.vmem [resolvable:$true] %s34_s25  ;;  %s59_s0 = int_to_ptr.hbm [resolvable:$true] %s58_s0 }
   0xa   :  { %37 = dma.hbm_to_vmem [thread:$0]  %s33_s23, 128, %s35_s25, [#allocation7]  }
   0xb   :  { %s1886_s28 = smov [#allocation9]   ;;  %s1887_s30 = smov 128  }
   0xc   :  { %s60_s29 = sshll.u32 %s1886_s28, 4  ;;  %s1888_s12 = smov 8   ;;  %s61_s29 = int_to_ptr.vmem [resolvable:$true] %s60_s29 }
   0xd   :  { %66 = dma.hbm_to_vmem [thread:$0]  %s59_s0, 512, %s61_s29, [#allocation10], %s1887_s30, %s1887_s30, %s1888_s12  }
   0xe   :  { %1878 = dma.done.wait [#allocation7], 128  }
   0xf   :  { %1879 = vsyncadd [#allocation7], 4294967168 }
  0x10   :  { %1880 = dma.done.wait [#allocation10], 512  }
  0x11   :  { %1881 = vsyncadd [#allocation10], 4294966784  ;;  %v79_v0 = vld [vmem:[%s2389_s5 + $0x18] sm:$0xff]  ;;  %v1968_v2 = vld [vmem:[#allocation9 + $0x18] sm:$0xff]  ;;  %vm84_vm0 = vcmask 261120   ;;  %s1889_s17 = smov 32  }
  0x12   :  { %v112_v1 = vld [vmem:[%s2392_s8 + $0x18] sm:$0xff]  ;;  %100 = vmatpush.msra.mxu0 %v79_v0  ;;  %v78_v3 = vld [vmem:[%s2389_s5 + $0x10] sm:$0xff]  ;;  %v1976_v5 = vld [vmem:[#allocation9 + $0x10] sm:$0xff]  ;;  %227 = vmatpush.msra.mxu3 %v1968_v2  ;;  %s1891_s12 = smov 64   ;;  %s2152_s13 = sld [smem:[#allocation5 + $0x1]] }
  0x13   :  { %129 = vmatpush.msra.mxu1 %v112_v1  ;;  %v111_v4 = vld [vmem:[%s2392_s8 + $0x10] sm:$0xff]  ;;  %v77_v6 = vld [vmem:[%s2389_s5 + $0x8] sm:$0xff]  ;;  %v1988_v8 = vld [vmem:[%s2391_s7 + $0x18] sm:$0xff]  ;;  %v146_v1 = vlaneseq  ;;  %s2186_s15 = sld [smem:[#allocation5 + $0x2]] }
  0x14   :  { %v110_v7 = vld [vmem:[%s2392_s8 + $0x8] sm:$0xff]  ;;  %101 = vmatpush.msra.mxu0 %v78_v3  ;;  %v1990_v9 = vld [vmem:[#allocation9 + $0x8] sm:$0xff]  ;;  %228 = vmatpush.msra.mxu3 %v1976_v5  ;;  %v2003_v12 = vld [vmem:[%s2391_s7 + $0x10] sm:$0xff]  ;;  %s2220_s16 = sld [smem:[#allocation5 + $0x3]] }
  0x15   :  { %130 = vmatpush.msra.mxu1 %v111_v4  ;;  %166 = vmatpush.msra.mxu2 %v1988_v8  ;;  %v76_v10 = vld [vmem:[%s2389_s5] sm:$0xff]  ;;  %v2005_v13 = vld [vmem:[#allocation9] sm:$0xff]  ;;  %v75_v14 = vld [vmem:[#allocation6] sm:$0xff]  ;;  %v2132_v4 = vshrl.u32 %v146_v1, 7  ;;  %s2258_s20 = sld [smem:[#allocation5 + $0x4]] }
  0x16   :  { %v109_v11 = vld [vmem:[%s2392_s8] sm:$0xff]  ;;  %102 = vmatpush.msra.mxu0 %v77_v6  ;;  %229 = vmatpush.msra.mxu3 %v1990_v9  ;;  %v2017_v16 = vld [vmem:[%s2391_s7 + $0x8] sm:$0xff]  ;;  %v2054_v21 = vld [vmem:[%s2386_s2 + $0x10] sm:$0xff]  ;;  %s2290_s24 = sld [smem:[#allocation5 + $0x5]] }
  0x17   :  { %131 = vmatpush.msra.mxu1 %v110_v7  ;;  %167 = vmatpush.msra.mxu2 %v2003_v12  ;;  %v2012_v15 = vld [vmem:[%s2386_s2] sm:$0xff]  ;;  %v2047_v20 = vld [vmem:[%s2386_s2 + $0x8] sm:$0xff]  ;;  %v2075_v22 = vld [vmem:[%s2386_s2 + $0x18] sm:$0xff]  ;;  %s2322_s0 = sld [smem:[#allocation5 + $0x6]] }
  0x18   :  { %103 = vmatpush.msra.mxu0 %v76_v10  ;;  %230 = vmatpush.msra.mxu3 %v2005_v13  ;;  %v2027_v17 = vld [vmem:[%s2391_s7] sm:$0xff]  ;;  %v1606_v24 = vld [vmem:[%s2386_s2 + $0x28] sm:$0xff]  ;;  %v1612_v25 = vld [vmem:[%s2386_s2 + $0x30] sm:$0xff]  ;;  %p485_p1 = scmp.eq.s32.totalorder %s2152_s13, 0  ;;  %s2354_s30 = sld [smem:[#allocation5 + $0x7]] }
  0x19   :  { %132 = vmatpush.msra.mxu1 %v109_v11  ;;  %1574 = vmatmul.msk.f32.vlgmr.msra.gmra.mxu0 %vm84_vm0, %v75_v14  ;;  %v1631_v18 = vld [vmem:[%s2388_s4] ss:$0 sm:$0xff]  ;;  %v1618_v26 = vld [vmem:[%s2386_s2 + $0x38] sm:$0xff]  ;;  %p660_p2 = scmp.eq.s32.totalorder %s2186_s15, 0 }
  0x1a   :  { %1575 = vmatmul.msk.f32.vlgmr.msra.gmra.mxu1 %vm84_vm0, %v75_v14  ;;  %1578 = vmatmul.msk.f32.vlgmr.msra.gmra.mxu3 %vm84_vm0, %v2012_v15  ;;  %v148_v19 = vld [vmem:[%s2387_s3] sm:$0x1]  ;;  %s486_s14 = scalar_select %p485_p1, 1, 0 }
  0x1b   :  { %168 = vmatpush.msra.mxu2 %v2017_v16  ;;  %403 = vmatpush.msrb.mxu1 %v1968_v2  ;;  %v1600_v23 = vld [vmem:[%s2386_s2 + $0x20] sm:$0xff]  ;;  %s661_s10 = scalar_select %p660_p2, 1, 0 }
  0x1c   :  { %578 = vmatpush.msrb.mxu3 %v1968_v2  ;;  %196 = vrot.lane.b32.xlu2 %v1631_v18, %s1889_s17  ;;  %v1632_v27 = vld [vmem:[%s2390_s6] ss:$0 sm:$0xff]  ;;  %s2127_s6 = sld [smem:[#allocation5]]  ;;  %p835_p3 = scmp.eq.s32.totalorder %s2220_s16, 0 }
  0x1d   :  { %169 = vmatpush.msra.mxu2 %v2027_v17  ;;  %404 = vmatpush.msrb.mxu1 %v1976_v5  ;;  %v1633_v28 = vld [vmem:[%s2393_s9] ss:$0 sm:$0xff]  ;;  %s1890_s9 = smov 96   ;;  %p1010_p4 = scmp.eq.s32.totalorder %s2258_s20, 0 }
  0x1e   :  { %579 = vmatpush.msrb.mxu3 %v1976_v5  ;;  %1576 = vmatmul.msk.f32.vlgmr.msra.gmra.mxu2 %vm84_vm0, %v148_v19  ;;  %p1185_p5 = scmp.eq.s32.totalorder %s2290_s24, 0  ;;  %p1360_p6 = scmp.eq.s32.totalorder %s2322_s0, 0 }
  0x1f   :  { %405 = vmatpush.msrb.mxu1 %v1990_v9  ;;  %346 = vmatpush.msrb.mxu0 %v1988_v8  ;;  %s1011_s23 = scalar_select %p1010_p4, 1, 0 }
  0x20   :  { %580 = vmatpush.msrb.mxu3 %v1990_v9  ;;  %521 = vmatpush.msrb.mxu2 %v1988_v8  ;;  %s1186_s27 = scalar_select %p1185_p5, 1, 0 }
  0x21   :  { %406 = vmatpush.msrb.mxu1 %v2005_v13  ;;  %347 = vmatpush.msrb.mxu0 %v2003_v12  ;;  %s1361_s5 = scalar_select %p1360_p6, 1, 0 }
  0x22   :  { %581 = vmatpush.msrb.mxu3 %v2005_v13  ;;  %1583 = vmatmul.msk.f32.vlgmr.msrb.gmra.mxu1 %vm84_vm0, %v2047_v20  ;;  %p309_p0 = scmp.eq.s32.totalorder %s2127_s6, 0  ;;  %p1535_p7 = scmp.eq.s32.totalorder %s2354_s30, 0 }
  0x23   :  { %1589 = vmatmul.msk.f32.vlgmr.msrb.gmra.mxu3 %vm84_vm0, %v2054_v21  ;;  %753 = vmatpush.msra.mxu1 %v1968_v2 }
  0x24   :  { %928 = vmatpush.msra.mxu3 %v1968_v2  ;;  %348 = vmatpush.msrb.mxu0 %v2017_v16  ;;  %s310_s1 = scalar_select %p309_p0, 1, 0 }
  0x25   :  { %754 = vmatpush.msra.mxu1 %v1976_v5  ;;  %522 = vmatpush.msrb.mxu2 %v2003_v12 }
  0x26   :  { %929 = vmatpush.msra.mxu3 %v1976_v5  ;;  %349 = vmatpush.msrb.mxu0 %v2027_v17 }
  0x27   :  { %755 = vmatpush.msra.mxu1 %v1990_v9  ;;  %523 = vmatpush.msrb.mxu2 %v2017_v16 }
  0x28   :  { %930 = vmatpush.msra.mxu3 %v1990_v9  ;;  %696 = vmatpush.msra.mxu0 %v1988_v8 }
  0x29   :  { %756 = vmatpush.msra.mxu1 %v2005_v13  ;;  %524 = vmatpush.msrb.mxu2 %v2027_v17 }
  0x2a   :  { %931 = vmatpush.msra.mxu3 %v2005_v13  ;;  %1595 = vmatmul.msk.f32.vlgmr.msra.gmra.mxu1 %vm84_vm0, %v2075_v22 }
  0x2b   :  { %1601 = vmatmul.msk.f32.vlgmr.msra.gmra.mxu3 %vm84_vm0, %v1600_v23  ;;  %1103 = vmatpush.msrb.mxu1 %v1968_v2 }
  0x2c   :  { %1278 = vmatpush.msrb.mxu3 %v1968_v2  ;;  %697 = vmatpush.msra.mxu0 %v2003_v12 }
  0x2d   :  { %1104 = vmatpush.msrb.mxu1 %v1976_v5  ;;  %871 = vmatpush.msra.mxu2 %v1988_v8 }
  0x2e   :  { %1279 = vmatpush.msrb.mxu3 %v1976_v5  ;;  %698 = vmatpush.msra.mxu0 %v2017_v16 }
  0x2f   :  { %1105 = vmatpush.msrb.mxu1 %v1990_v9  ;;  %872 = vmatpush.msra.mxu2 %v2003_v12 }
  0x30   :  { %1280 = vmatpush.msrb.mxu3 %v1990_v9  ;;  %699 = vmatpush.msra.mxu0 %v2027_v17 }
  0x31   :  { %1106 = vmatpush.msrb.mxu1 %v2005_v13  ;;  %873 = vmatpush.msra.mxu2 %v2017_v16 }
  0x32   :  { %1281 = vmatpush.msrb.mxu3 %v2005_v13  ;;  %1607 = vmatmul.msk.f32.vlgmr.msrb.gmra.mxu1 %vm84_vm0, %v1606_v24 }
  0x33   :  { %1613 = vmatmul.msk.f32.vlgmr.msrb.gmra.mxu3 %vm84_vm0, %v1612_v25  ;;  %1453 = vmatpush.msra.mxu1 %v1968_v2 }
  0x34   :  { %874 = vmatpush.msra.mxu2 %v2027_v17 }
  0x35   :  { %1454 = vmatpush.msra.mxu1 %v1976_v5  ;;  %v257_v5 = vstv %s2127_s6 }
  0x36   :  { %vm258_vm9 = vcmp.lt.s32.totalorder %v2132_v4, %v257_v5 }
  0x37   :  { %1455 = vmatpush.msra.mxu1 %v1990_v9 }
  0x39   :  { %1456 = vmatpush.msra.mxu1 %v2005_v13 }
  0x3a   :  { %1619 = vmatmul.msk.f32.vlgmr.msra.gmra.mxu1 %vm84_vm0, %v1618_v26 }
  0x96   :  { %v105_v29 = vpop.f32.mrf.mxu0 }
  0x97   :  { %v106_v30 = vadd.f32 %v1632_v27, %v105_v29  ;;  %v134_v31 = vpop.f32.mrf.mxu1 }
  0x98   :  { %v135_v32 = vadd.f32 %v1633_v28, %v134_v31 }
  0x99   :  { %108 = vst [vmem:[#allocation2] sm:$0xff] %v106_v30 }
  0x9a   :  { %137 = vst.msk [vmem:[#allocation3] sm:$0xff] %vm84_vm0, %v135_v32 }
  0x9d   :  { %v232_v36 = vpop.f32.mrf.mxu3 }
  0xa0   :  { %v150_v33 = vld [vmem:[#allocation2] sm:$0x1] }
  0xa1   :  { %v1634_v34 = vld [vmem:[#allocation3] ss:$0 sm:$0xff]  ;;  %v171_v35 = vpop.f32.mrf.mxu2 }
  0xa2   :  { %v172_v37 = vadd.f32 %v171_v35, %v150_v33  ;;  %v236_v38 = vadd.f32 %v1634_v34, %v232_v36 }
  0xa4   :  { %v1577_v39 = vmul.f32 -1.442695, %v172_v37  ;;  %v1579_v40 = vmul.f32 -1.442695, %v236_v38 }
  0xa6   :  { %1642 = vpow2.f32 %v1577_v39 }
  0xa7   :  { %1644 = vpow2.f32 %v1579_v40 }
  0xac   :  { %v1643_v41 = vpop.eup %1642 }
  0xad   :  { %v1645_v42 = vpop.eup %1644  ;;  %v177_v44 = vadd.f32 1.0, %v1643_v41 }
  0xae   :  { %v240_v43 = vadd.f32 1.0, %v1645_v42 }
  0xaf   :  { %vm183_vm2 = vweird.f32 %v177_v44  ;;  %v187_v55 = vand.u32 2147483647, %v177_v44  ;;  %v189_v57 = vand.u32 2147483648, %v177_v44 }
  0xb0   :  { %1646 = vrcp.f32 %v240_v43  ;;  %vm246_vm4 = vweird.f32 %v240_v43  ;;  %v252_v54 = vand.u32 2147483648, %v240_v43  ;;  %v250_v56 = vand.u32 2147483647, %v240_v43 }
  0xb1   :  { %1648 = vrcp.f32 %v177_v44  ;;  %vm188_vm7 = vcmp.eq.f32.partialorder %v187_v55, 8.507059e+37  ;;  %v190_v62 = vor.u32 1.1754944e-38, %v189_v57 }
  0xb2   :  { %v253_v60 = vor.u32 1.1754944e-38, %v252_v54  ;;  %vm251_vm8 = vcmp.eq.f32.partialorder %v250_v56, 8.507059e+37 }
  0xb6   :  { %v1647_v45 = vpop.eup %1646 }
  0xb7   :  { %v242_v46 = vmul.f32 %v1647_v45, %v240_v43  ;;  %v1649_v47 = vpop.eup %1648  ;;  %vm247_vm1 = vweird.f32 %v1647_v45 }
  0xb8   :  { %v179_v49 = vmul.f32 %v1649_v47, %v177_v44  ;;  %vm184_vm3 = vweird.f32 %v1649_v47  ;;  %vm248_vm5 = vmor %vm246_vm4, %vm247_vm1 }
  0xb9   :  { %v243_v48 = vsub.f32 1.0, %v242_v46  ;;  %vm185_vm6 = vmor %vm183_vm2, %vm184_vm3 }
  0xba   :  { %v180_v51 = vsub.f32 1.0, %v179_v49 }
  0xbb   :  { %v244_v50 = vmul.f32 %v1647_v45, %v243_v48 }
  0xbc   :  { %v181_v53 = vmul.f32 %v1649_v47, %v180_v51  ;;  %v197_v51 = vpop.permute.xlu2 %196 }
  0xbd   :  { %v245_v52 = vadd.f32 %v1647_v45, %v244_v50 }
  0xbe   :  { %v182_v59 = vadd.f32 %v1649_v47, %v181_v53 }
  0xbf   :  { %v249_v58 = vsel %vm248_vm5, %v1647_v45, %v245_v52  ;;  %v311_v52 = vstv %s310_s1  ;;  %vm329_vm5 = vcmask 516096  }
  0xc0   :  { %v186_v61 = vsel %vm185_vm6, %v1649_v47, %v182_v59  ;;  %v254_v63 = vsel %vm251_vm8, %v253_v60, %v249_v58  ;;  %vm312_vm14 = vcmp.eq.s32.totalorder %v311_v52, 1  ;;  %v1635_v59 = vld [vmem:[#allocation3 + $0x1] ss:$0 sm:$0xff]  ;;  %v408_v60 = vpop.f32.mrf.mxu1 }
  0xc1   :  { %v2129_v0 = vsel %vm188_vm7, %v190_v62, %v186_v61  ;;  %v259_v2 = vmul.f32 1.442695, %v254_v63  ;;  %v412_v61 = vadd.f32 %v1635_v59, %v408_v60 }
  0xc2   :  { %v262_v3 = vmul.f32 1.442695, %v2129_v0  ;;  %v199_v54 = vmul.f32 %v197_v51, %v2129_v0 }
  0xc3   :  { %1650 = vpow2.f32 %v259_v2  ;;  %v1584_v62 = vmul.f32 -1.442695, %v412_v61 }
  0xc4   :  { %1652 = vpow2.f32 %v262_v3 }
  0xc5   :  { %1654 = vtanh.f32 %v172_v37 }
  0xc9   :  { %v1651_v6 = vpop.eup %1650 }
  0xca   :  { %v1653_v7 = vpop.eup %1652  ;;  %v261_v9 = vsel %vm258_vm9, %v1651_v6, 0.0 }
  0xcb   :  { %287 = vrot.lane.b32.xlu0 %v1653_v7, %s1890_s9  ;;  %v291_v10 = vmul.f32 %v261_v9, %v2012_v15  ;;  %v264_v11 = vsel %vm84_vm0, %v261_v9, 0.0  ;;  %v1655_v25 = vpop.eup %1654 }
  0xcc   :  { %v265_v13 = vrot.slane %v264_v11, 4 }
  0xcd   :  { %v292_v14 = vsel %vm84_vm0, %v291_v10, 0.0 }
  0xce   :  { %v293_v18 = vrot.slane %v292_v14, 4  ;;  %v266_v19 = vadd.f32 %v265_v13, %v264_v11 }
  0xd0   :  { %v294_v23 = vadd.f32 %v293_v18, %v292_v14  ;;  %v267_v24 = vrot.slane %v266_v19, 2 }
  0xd2   :  { %v295_v26 = vrot.slane %v294_v23, 2  ;;  %v268_v27 = vadd.f32 %v267_v24, %v266_v19  ;;  %v433_v19 = vstv %s2152_s13 }
  0xd3   :  { %201 = vrot.lane.b32.xlu0 %v1655_v25, %s1889_s17  ;;  %vm434_vm4 = vcmp.lt.s32.totalorder %v2132_v4, %v433_v19 }
  0xd4   :  { %v296_v28 = vadd.f32 %v295_v26, %v294_v23  ;;  %v269_v29 = vrot.slane %v268_v27, 1 }
  0xd6   :  { %v297_v30 = vrot.slane %v296_v28, 1  ;;  %v270_v31 = vadd.f32 %v269_v29, %v268_v27 }
  0xd8   :  { %v298_v15 = vadd.f32 %v297_v30, %v296_v28  ;;  %v271_v32 = vadd.f32 %v1653_v7, %v270_v31 }
  0xda   :  { %300 = vrot.lane.b32.xlu1 %v298_v15, %s1890_s9  ;;  %1656 = vrcp.f32 %v271_v32  ;;  %v283_v36 = vand.u32 2147483648, %v271_v32  ;;  %v281_v38 = vand.u32 2147483647, %v271_v32  ;;  %vm277_vm11 = vweird.f32 %v271_v32 }
  0xdc   :  { %v284_v40 = vor.u32 1.1754944e-38, %v283_v36  ;;  %vm282_vm13 = vcmp.eq.f32.partialorder %v281_v38, 8.507059e+37 }
  0xe0   :  { %v1657_v33 = vpop.eup %1656 }
  0xe1   :  { %v273_v34 = vmul.f32 %v1657_v33, %v271_v32  ;;  %vm278_vm10 = vweird.f32 %v1657_v33 }
  0xe2   :  { %vm279_vm12 = vmor %vm277_vm11, %vm278_vm10 }
  0xe3   :  { %v274_v35 = vsub.f32 1.0, %v273_v34 }
  0xe5   :  { %v275_v37 = vmul.f32 %v1657_v33, %v274_v35 }
  0xe7   :  { %v276_v39 = vadd.f32 %v1657_v33, %v275_v37 }
  0xe9   :  { %v280_v41 = vsel %vm279_vm12, %v1657_v33, %v276_v39 }
  0xea   :  { %v285_v42 = vsel %vm282_vm13, %v284_v40, %v280_v41 }
  0xeb   :  { %305 = vrot.lane.b32.xlu1 %v285_v42, %s1890_s9 }
 0x13d   :  { %v288_v43 = vpop.permute.xlu0 %287 }
 0x13e   :  { %v290_v47 = vmul.f32 %v1655_v25, %v288_v43 }
 0x145   :  { %v202_v44 = vpop.permute.xlu0 %201 }
 0x146   :  { %v204_v45 = vmul.f32 %v202_v44, %v2129_v0 }
 0x148   :  { %206 = vrot.lane.b32.xlu2 %v204_v45, %s1889_s17 }
 0x14c   :  { %v301_v46 = vpop.permute.xlu1 %300 }
 0x14d   :  { %v303_v48 = vadd.f32 %v301_v46, %v290_v47 }
 0x15d   :  { %v306_v49 = vpop.permute.xlu1 %305 }
 0x15e   :  { %v308_v50 = vmul.f32 %v306_v49, %v303_v48 }
 0x160   :  { %314 = vrot.lane.b32.xlu0 %v308_v50, %s1891_s12 }
 0x1a2   :  { %v207_v53 = vpop.permute.xlu2 %206 }
 0x1a3   :  { %v209_v55 = vadd.f32 %v207_v53, %v199_v54 }
 0x1d2   :  { %v315_v56 = vpop.permute.xlu0 %314 }
 0x1d3   :  { %v2148_v57 = vsel %vm312_vm14, %v209_v55, %v315_v56 }
 0x1d4   :  { %1658 = vtanh.f32 %v2148_v57 }
 0x1d5   :  { %1660 = vpow2.f32 %v1584_v62 }
 0x1da   :  { %v1659_v58 = vpop.eup %1658 }
 0x1db   :  { %320 = vrot.lane.b32.xlu1 %v1659_v58, %s1889_s17  ;;  %v1661_v63 = vpop.eup %1660 }
 0x1dc   :  { %v416_v1 = vadd.f32 1.0, %v1661_v63 }
 0x1de   :  { %1662 = vrcp.f32 %v416_v1  ;;  %v428_v9 = vand.u32 2147483648, %v416_v1  ;;  %vm422_vm1 = vweird.f32 %v416_v1  ;;  %v426_v10 = vand.u32 2147483647, %v416_v1 }
 0x1e0   :  { %v429_v13 = vor.u32 1.1754944e-38, %v428_v9  ;;  %vm427_vm3 = vcmp.eq.f32.partialorder %v426_v10, 8.507059e+37 }
 0x1e4   :  { %v1663_v2 = vpop.eup %1662 }
 0x1e5   :  { %v418_v3 = vmul.f32 %v1663_v2, %v416_v1  ;;  %vm423_vm15 = vweird.f32 %v1663_v2 }
 0x1e6   :  { %vm424_vm2 = vmor %vm422_vm1, %vm423_vm15 }
 0x1e7   :  { %v419_v5 = vsub.f32 1.0, %v418_v3 }
 0x1e9   :  { %v420_v6 = vmul.f32 %v1663_v2, %v419_v5 }
 0x1eb   :  { %v421_v7 = vadd.f32 %v1663_v2, %v420_v6 }
 0x1ed   :  { %v425_v11 = vsel %vm424_vm2, %v1663_v2, %v421_v7 }
 0x1ee   :  { %v430_v14 = vsel %vm427_vm3, %v429_v13, %v425_v11 }
 0x1ef   :  { %v435_v18 = vmul.f32 1.442695, %v430_v14 }
 0x1f1   :  { %1664 = vpow2.f32 %v435_v18 }
 0x1f7   :  { %v1665_v23 = vpop.eup %1664 }
 0x1f8   :  { %v437_v24 = vsel %vm434_vm4, %v1665_v23, 0.0 }
 0x1f9   :  { %v467_v25 = vmul.f32 %v2047_v20, %v437_v24  ;;  %v440_v41 = vsel %vm84_vm0, %v437_v24, 0.0 }
 0x1fa   :  { %v441_v42 = vrot.slane %v440_v41, 4 }
 0x1fb   :  { %v468_v26 = vsel %vm84_vm0, %v467_v25, 0.0 }
 0x1fc   :  { %v469_v27 = vrot.slane %v468_v26, 4  ;;  %v442_v45 = vadd.f32 %v441_v42, %v440_v41 }
 0x1fe   :  { %v470_v28 = vadd.f32 %v469_v27, %v468_v26  ;;  %v443_v50 = vrot.slane %v442_v45, 2  ;;  %v487_v26 = vstv %s486_s14 }
 0x1ff   :  { %vm488_vm14 = vcmp.eq.s32.totalorder %v487_v26, 1 }
 0x200   :  { %v471_v29 = vrot.slane %v470_v28, 2  ;;  %v444_v54 = vadd.f32 %v443_v50, %v442_v45 }
 0x202   :  { %v472_v15 = vadd.f32 %v471_v29, %v470_v28  ;;  %v445_v58 = vrot.slane %v444_v54, 1 }
 0x204   :  { %v473_v32 = vrot.slane %v472_v15, 1  ;;  %v446_v59 = vadd.f32 %v445_v58, %v444_v54 }
 0x206   :  { %v474_v33 = vadd.f32 %v473_v32, %v472_v15  ;;  %v583_v32 = vpop.f32.mrf.mxu3 }
 0x24d   :  { %v321_v30 = vpop.permute.xlu1 %320 }
 0x24e   :  { %v323_v31 = vmul.f32 %v321_v30, %v2129_v0  ;;  %v331_v0 = vld [vmem:[#allocation2 + $0x1] sm:$0x1] }
 0x250   :  { %325 = vrot.lane.b32.xlu2 %v323_v31, %s1891_s12 }
 0x258   :  { %476 = vrot.lane.b32.xlu2 %v474_v33, %s1890_s9  ;;  %v1636_v33 = vld [vmem:[#allocation3 + $0x2] ss:$0 sm:$0xff] }
 0x2aa   :  { %v326_v34 = vpop.permute.xlu2 %325 }
 0x2ab   :  { %v328_v20 = vsel %vm84_vm0, %v326_v34, %v2148_v57  ;;  %1580 = vmatmul.msk.f32.vlgmr.msrb.gmra.mxu0 %vm84_vm0, %v326_v34  ;;  %v587_v34 = vadd.f32 %v1636_v33, %v583_v32 }
 0x2ac   :  { %330 = vst.msk [vmem:[#allocation11] sm:$0x1] %vm329_vm5, %v328_v20  ;;  %1046 = vmatpush.msrb.mxu0 %v1988_v8 }
 0x2ad   :  { %v1590_v20 = vmul.f32 -1.442695, %v587_v34 }
 0x2ae   :  { %1047 = vmatpush.msrb.mxu0 %v2003_v12 }
 0x2b0   :  { %1048 = vmatpush.msrb.mxu0 %v2017_v16 }
 0x2b2   :  { %1049 = vmatpush.msrb.mxu0 %v2027_v17  ;;  %v477_v19 = vpop.permute.xlu2 %476 }
 0x328   :  { %v351_v35 = vpop.f32.mrf.mxu0 }
 0x329   :  { %v352_v36 = vadd.f32 %v351_v35, %v331_v0 }
 0x32b   :  { %v1581_v37 = vmul.f32 -1.442695, %v352_v36  ;;  %1666 = vtanh.f32 %v352_v36 }
 0x32d   :  { %1668 = vpow2.f32 %v1581_v37 }
 0x331   :  { %v1667_v38 = vpop.eup %1666 }
 0x332   :  { %376 = vrot.lane.b32.xlu1 %v1667_v38, %s1889_s17 }
 0x333   :  { %v1669_v39 = vpop.eup %1668 }
 0x334   :  { %v357_v40 = vadd.f32 1.0, %v1669_v39 }
 0x336   :  { %1670 = vrcp.f32 %v357_v40  ;;  %v369_v47 = vand.u32 2147483648, %v357_v40  ;;  %v367_v49 = vand.u32 2147483647, %v357_v40  ;;  %vm363_vm7 = vweird.f32 %v357_v40 }
 0x338   :  { %v370_v52 = vor.u32 1.1754944e-38, %v369_v47  ;;  %vm368_vm9 = vcmp.eq.f32.partialorder %v367_v49, 8.507059e+37 }
 0x33c   :  { %v1671_v43 = vpop.eup %1670 }
 0x33d   :  { %v359_v44 = vmul.f32 %v1671_v43, %v357_v40  ;;  %vm364_vm6 = vweird.f32 %v1671_v43 }
 0x33e   :  { %vm365_vm8 = vmor %vm363_vm7, %vm364_vm6 }
 0x33f   :  { %v360_v46 = vsub.f32 1.0, %v359_v44 }
 0x341   :  { %v361_v48 = vmul.f32 %v1671_v43, %v360_v46  ;;  %v608_v46 = vstv %s2186_s15  ;;  %s1563_s15 = sshll.u32 %s2395_s11, 4  ;;  %s1564_s15 = int_to_ptr.hbm [resolvable:$true] %s1563_s15 }
 0x342   :  { %vm609_vm4 = vcmp.lt.s32.totalorder %v2132_v4, %v608_v46 }
 0x343   :  { %v362_v51 = vadd.f32 %v1671_v43, %v361_v48 }
 0x345   :  { %v366_v53 = vsel %vm365_vm8, %v1671_v43, %v362_v51 }
 0x346   :  { %v2171_v55 = vsel %vm368_vm9, %v370_v52, %v366_v53 }
 0x347   :  { %v438_v56 = vmul.f32 1.442695, %v2171_v55  ;;  %v374_v28 = vmul.f32 %v2171_v55, %v2148_v57 }
 0x349   :  { %1672 = vpow2.f32 %v438_v56 }
 0x34f   :  { %v1673_v60 = vpop.eup %1672 }
 0x350   :  { %463 = vrot.lane.b32.xlu0 %v1673_v60, %s1890_s9  ;;  %v447_v61 = vadd.f32 %v1673_v60, %v446_v59 }
 0x352   :  { %1674 = vrcp.f32 %v447_v61  ;;  %v459_v2 = vand.u32 2147483648, %v447_v61  ;;  %v457_v5 = vand.u32 2147483647, %v447_v61  ;;  %vm453_vm11 = vweird.f32 %v447_v61 }
 0x354   :  { %v460_v7 = vor.u32 1.1754944e-38, %v459_v2  ;;  %vm458_vm13 = vcmp.eq.f32.partialorder %v457_v5, 8.507059e+37 }
 0x358   :  { %v1675_v62 = vpop.eup %1674 }
 0x359   :  { %v449_v63 = vmul.f32 %v1675_v62, %v447_v61  ;;  %vm454_vm10 = vweird.f32 %v1675_v62 }
 0x35a   :  { %vm455_vm12 = vmor %vm453_vm11, %vm454_vm10 }
 0x35b   :  { %v450_v1 = vsub.f32 1.0, %v449_v63 }
 0x35d   :  { %v451_v3 = vmul.f32 %v1675_v62, %v450_v1 }
 0x35f   :  { %v452_v6 = vadd.f32 %v1675_v62, %v451_v3 }
 0x361   :  { %v456_v9 = vsel %vm455_vm12, %v1675_v62, %v452_v6 }
 0x362   :  { %v461_v10 = vsel %vm458_vm13, %v460_v7, %v456_v9 }
 0x363   :  { %481 = vrot.lane.b32.xlu0 %v461_v10, %s1890_s9 }
 0x3a4   :  { %v377_v11 = vpop.permute.xlu1 %376 }
 0x3a5   :  { %v379_v13 = vmul.f32 %v377_v11, %v2171_v55 }
 0x3a7   :  { %381 = vrot.lane.b32.xlu1 %v379_v13, %s1889_s17 }
 0x3c2   :  { %v464_v14 = vpop.permute.xlu0 %463 }
 0x3c3   :  { %v466_v18 = vmul.f32 %v1667_v38, %v464_v14 }
 0x3c5   :  { %v479_v23 = vadd.f32 %v477_v19, %v466_v18 }
 0x3d5   :  { %v482_v24 = vpop.permute.xlu0 %481 }
 0x3d6   :  { %v484_v25 = vmul.f32 %v482_v24, %v479_v23 }
 0x3d8   :  { %490 = vrot.lane.b32.xlu2 %v484_v25, %s1891_s12 }
 0x419   :  { %v382_v27 = vpop.permute.xlu1 %381 }
 0x41a   :  { %v384_v29 = vadd.f32 %v382_v27, %v374_v28 }
 0x432   :  { %v491_v30 = vpop.permute.xlu2 %490 }
 0x433   :  { %v2182_v31 = vsel %vm488_vm14, %v384_v29, %v491_v30 }
 0x434   :  { %1676 = vtanh.f32 %v2182_v31 }
 0x435   :  { %1678 = vpow2.f32 %v1590_v20 }
 0x43a   :  { %v1677_v15 = vpop.eup %1676 }
 0x43b   :  { %496 = vrot.lane.b32.xlu0 %v1677_v15, %s1889_s17  ;;  %v1679_v0 = vpop.eup %1678 }
 0x43c   :  { %v591_v35 = vadd.f32 1.0, %v1679_v0 }
 0x43e   :  { %1680 = vrcp.f32 %v591_v35  ;;  %v603_v40 = vand.u32 2147483648, %v591_v35  ;;  %vm597_vm1 = vweird.f32 %v591_v35  ;;  %v601_v41 = vand.u32 2147483647, %v591_v35 }
 0x440   :  { %v604_v43 = vor.u32 1.1754944e-38, %v603_v40  ;;  %vm602_vm3 = vcmp.eq.f32.partialorder %v601_v41, 8.507059e+37 }
 0x444   :  { %v1681_v36 = vpop.eup %1680 }
 0x445   :  { %v593_v57 = vmul.f32 %v1681_v36, %v591_v35  ;;  %vm598_vm15 = vweird.f32 %v1681_v36 }
 0x446   :  { %vm599_vm2 = vmor %vm597_vm1, %vm598_vm15 }
 0x447   :  { %v594_v37 = vsub.f32 1.0, %v593_v57 }
 0x449   :  { %v595_v38 = vmul.f32 %v1681_v36, %v594_v37 }
 0x44b   :  { %v596_v39 = vadd.f32 %v1681_v36, %v595_v38 }
 0x44d   :  { %v600_v42 = vsel %vm599_vm2, %v1681_v36, %v596_v39 }
 0x44e   :  { %v605_v44 = vsel %vm602_vm3, %v604_v43, %v600_v42 }
 0x44f   :  { %v610_v45 = vmul.f32 1.442695, %v605_v44 }
 0x451   :  { %1682 = vpow2.f32 %v610_v45 }
 0x457   :  { %v1683_v47 = vpop.eup %1682 }
 0x458   :  { %v612_v48 = vsel %vm609_vm4, %v1683_v47, 0.0  ;;  %v662_v47 = vstv %s661_s10 }
 0x459   :  { %v642_v49 = vmul.f32 %v2054_v21, %v612_v48  ;;  %v506_v21 = vld [vmem:[#allocation2 + $0x2] sm:$0x1]  ;;  %vm663_vm14 = vcmp.eq.s32.totalorder %v662_v47, 1 }
 0x45b   :  { %v643_v50 = vsel %vm84_vm0, %v642_v49, 0.0 }
 0x45c   :  { %v644_v51 = vrot.slane %v643_v50, 4 }
 0x45e   :  { %v645_v52 = vadd.f32 %v644_v51, %v643_v50 }
 0x460   :  { %v646_v53 = vrot.slane %v645_v52, 2 }
 0x462   :  { %v647_v58 = vadd.f32 %v646_v53, %v645_v52 }
 0x464   :  { %v648_v59 = vrot.slane %v647_v58, 1 }
 0x466   :  { %v649_v60 = vadd.f32 %v648_v59, %v647_v58 }
 0x4ad   :  { %v497_v54 = vpop.permute.xlu0 %496 }
 0x4ae   :  { %v499_v56 = vmul.f32 %v497_v54, %v2171_v55  ;;  %v758_v54 = vpop.f32.mrf.mxu1 }
 0x4b0   :  { %501 = vrot.lane.b32.xlu1 %v499_v56, %s1891_s12  ;;  %v1637_v56 = vld [vmem:[#allocation3 + $0x3] ss:$0 sm:$0xff] }
 0x4b1   :  { %v762_v58 = vadd.f32 %v1637_v56, %v758_v54 }
 0x4b3   :  { %v1596_v59 = vmul.f32 -1.442695, %v762_v58 }
 0x4b8   :  { %651 = vrot.lane.b32.xlu1 %v649_v60, %s1890_s9 }
 0x522   :  { %v502_v61 = vpop.permute.xlu1 %501 }
 0x523   :  { %v504_v62 = vsel %vm84_vm0, %v502_v61, %v2182_v31  ;;  %1586 = vmatmul.msk.f32.vlgmr.msrb.gmra.mxu2 %vm84_vm0, %v502_v61 }
 0x524   :  { %505 = vst.msk [vmem:[#allocation11 + $0x1] sm:$0x1] %vm329_vm5, %v504_v62  ;;  %1221 = vmatpush.msrb.mxu2 %v1988_v8  ;;  %v615_v8 = vsel %vm84_vm0, %v612_v48, 0.0 }
 0x525   :  { %v616_v6 = vrot.slane %v615_v8, 4 }
 0x526   :  { %1222 = vmatpush.msrb.mxu2 %v2003_v12 }
 0x527   :  { %v617_v9 = vadd.f32 %v616_v6, %v615_v8 }
 0x528   :  { %1223 = vmatpush.msrb.mxu2 %v2017_v16 }
 0x529   :  { %v618_v18 = vrot.slane %v617_v9, 2 }
 0x52a   :  { %1224 = vmatpush.msrb.mxu2 %v2027_v17  ;;  %v652_v43 = vpop.permute.xlu1 %651 }
 0x52b   :  { %v619_v25 = vadd.f32 %v618_v18, %v617_v9 }
 0x52d   :  { %v620_v28 = vrot.slane %v619_v25, 1 }
 0x52f   :  { %v621_v29 = vadd.f32 %v620_v28, %v619_v25 }
 0x5a6   :  { %v526_v55 = vpop.f32.mrf.mxu2 }
 0x5a7   :  { %v527_v63 = vadd.f32 %v526_v55, %v506_v21 }
 0x5a9   :  { %v1587_v1 = vmul.f32 -1.442695, %v527_v63  ;;  %1684 = vtanh.f32 %v527_v63 }
 0x5ab   :  { %1686 = vpow2.f32 %v1587_v1 }
 0x5af   :  { %v1685_v2 = vpop.eup %1684 }
 0x5b0   :  { %551 = vrot.lane.b32.xlu0 %v1685_v2, %s1889_s17 }
 0x5b1   :  { %v1687_v3 = vpop.eup %1686 }
 0x5b2   :  { %v532_v5 = vadd.f32 1.0, %v1687_v3 }
 0x5b4   :  { %1688 = vrcp.f32 %v532_v5  ;;  %v544_v11 = vand.u32 2147483648, %v532_v5  ;;  %v542_v14 = vand.u32 2147483647, %v532_v5  ;;  %vm538_vm7 = vweird.f32 %v532_v5 }
 0x5b6   :  { %v545_v23 = vor.u32 1.1754944e-38, %v544_v11  ;;  %vm543_vm9 = vcmp.eq.f32.partialorder %v542_v14, 8.507059e+37 }
 0x5ba   :  { %v1689_v12 = vpop.eup %1688 }
 0x5bb   :  { %v534_v7 = vmul.f32 %v1689_v12, %v532_v5  ;;  %vm539_vm6 = vweird.f32 %v1689_v12 }
 0x5bc   :  { %vm540_vm8 = vmor %vm538_vm7, %vm539_vm6 }
 0x5bd   :  { %v535_v10 = vsub.f32 1.0, %v534_v7 }
 0x5bf   :  { %v536_v13 = vmul.f32 %v1689_v12, %v535_v10 }
 0x5c1   :  { %v537_v19 = vadd.f32 %v1689_v12, %v536_v13 }
 0x5c3   :  { %v541_v24 = vsel %vm540_vm8, %v1689_v12, %v537_v19  ;;  %v783_v12 = vstv %s2220_s16 }
 0x5c4   :  { %v2205_v26 = vsel %vm543_vm9, %v545_v23, %v541_v24  ;;  %vm784_vm4 = vcmp.lt.s32.totalorder %v2132_v4, %v783_v12 }
 0x5c5   :  { %v613_v27 = vmul.f32 1.442695, %v2205_v26  ;;  %v549_v49 = vmul.f32 %v2205_v26, %v2182_v31 }
 0x5c7   :  { %1690 = vpow2.f32 %v613_v27 }
 0x5cd   :  { %v1691_v30 = vpop.eup %1690 }
 0x5ce   :  { %638 = vrot.lane.b32.xlu2 %v1691_v30, %s1890_s9  ;;  %v622_v15 = vadd.f32 %v1691_v30, %v621_v29  ;;  %v681_v30 = vld [vmem:[#allocation2 + $0x3] sm:$0x1] }
 0x5d0   :  { %1692 = vrcp.f32 %v622_v15  ;;  %v634_v20 = vand.u32 2147483648, %v622_v15  ;;  %v632_v35 = vand.u32 2147483647, %v622_v15  ;;  %vm628_vm11 = vweird.f32 %v622_v15 }
 0x5d2   :  { %v635_v57 = vor.u32 1.1754944e-38, %v634_v20  ;;  %vm633_vm13 = vcmp.eq.f32.partialorder %v632_v35, 8.507059e+37 }
 0x5d6   :  { %v1693_v32 = vpop.eup %1692 }
 0x5d7   :  { %v624_v33 = vmul.f32 %v1693_v32, %v622_v15  ;;  %vm629_vm10 = vweird.f32 %v1693_v32 }
 0x5d8   :  { %vm630_vm12 = vmor %vm628_vm11, %vm629_vm10 }
 0x5d9   :  { %v625_v34 = vsub.f32 1.0, %v624_v33 }
 0x5db   :  { %v626_v0 = vmul.f32 %v1693_v32, %v625_v34 }
 0x5dd   :  { %v627_v36 = vadd.f32 %v1693_v32, %v626_v0 }
 0x5df   :  { %v631_v37 = vsel %vm630_vm12, %v1693_v32, %v627_v36 }
 0x5e0   :  { %v636_v38 = vsel %vm633_vm13, %v635_v57, %v631_v37 }
 0x5e1   :  { %656 = vrot.lane.b32.xlu2 %v636_v38, %s1890_s9 }
 0x622   :  { %v552_v39 = vpop.permute.xlu0 %551 }
 0x623   :  { %v554_v40 = vmul.f32 %v552_v39, %v2205_v26 }
 0x625   :  { %556 = vrot.lane.b32.xlu0 %v554_v40, %s1889_s17 }
 0x628   :  { %v639_v41 = vpop.permute.xlu2 %638 }
 0x629   :  { %v641_v42 = vmul.f32 %v1685_v2, %v639_v41 }
 0x62b   :  { %v654_v44 = vadd.f32 %v652_v43, %v641_v42 }
 0x63b   :  { %v657_v45 = vpop.permute.xlu2 %656 }
 0x63c   :  { %v659_v46 = vmul.f32 %v657_v45, %v654_v44 }
 0x63e   :  { %665 = vrot.lane.b32.xlu1 %v659_v46, %s1891_s12 }
 0x697   :  { %v557_v48 = vpop.permute.xlu0 %556 }
 0x698   :  { %v559_v50 = vadd.f32 %v557_v48, %v549_v49 }
 0x6b0   :  { %v666_v51 = vpop.permute.xlu1 %665 }
 0x6b1   :  { %v2216_v52 = vsel %vm663_vm14, %v559_v50, %v666_v51 }
 0x6b2   :  { %1694 = vtanh.f32 %v2216_v52 }
 0x6b3   :  { %1696 = vpow2.f32 %v1596_v59 }
 0x6b8   :  { %v1695_v53 = vpop.eup %1694 }
 0x6b9   :  { %671 = vrot.lane.b32.xlu2 %v1695_v53, %s1889_s17  ;;  %v1697_v60 = vpop.eup %1696 }
 0x6ba   :  { %v766_v61 = vadd.f32 1.0, %v1697_v60 }
 0x6bc   :  { %1698 = vrcp.f32 %v766_v61  ;;  %v778_v1 = vand.u32 2147483648, %v766_v61  ;;  %vm772_vm1 = vweird.f32 %v766_v61  ;;  %v776_v2 = vand.u32 2147483647, %v766_v61 }
 0x6be   :  { %v779_v5 = vor.u32 1.1754944e-38, %v778_v1  ;;  %vm777_vm3 = vcmp.eq.f32.partialorder %v776_v2, 8.507059e+37 }
 0x6c2   :  { %v1699_v62 = vpop.eup %1698 }
 0x6c3   :  { %v768_v31 = vmul.f32 %v1699_v62, %v766_v61  ;;  %vm773_vm15 = vweird.f32 %v1699_v62 }
 0x6c4   :  { %vm774_vm2 = vmor %vm772_vm1, %vm773_vm15 }
 0x6c5   :  { %v769_v21 = vsub.f32 1.0, %v768_v31 }
 0x6c7   :  { %v770_v55 = vmul.f32 %v1699_v62, %v769_v21 }
 0x6c9   :  { %v771_v63 = vadd.f32 %v1699_v62, %v770_v55 }
 0x6cb   :  { %v775_v3 = vsel %vm774_vm2, %v1699_v62, %v771_v63 }
 0x6cc   :  { %v780_v8 = vsel %vm777_vm3, %v779_v5, %v775_v3 }
 0x6cd   :  { %v785_v6 = vmul.f32 1.442695, %v780_v8 }
 0x6cf   :  { %1700 = vpow2.f32 %v785_v6 }
 0x6d5   :  { %v1701_v7 = vpop.eup %1700 }
 0x6d6   :  { %v787_v9 = vsel %vm784_vm4, %v1701_v7, 0.0 }
 0x6d7   :  { %v817_v10 = vmul.f32 %v2075_v22, %v787_v9  ;;  %v1786_v22 = vld [vmem:[%s2391_s7 + $0x18] sm:$0xff]  ;;  %v790_v35 = vsel %vm84_vm0, %v787_v9, 0.0 }
 0x6d8   :  { %v791_v36 = vrot.slane %v790_v35, 4 }
 0x6d9   :  { %v818_v11 = vsel %vm84_vm0, %v817_v10, 0.0 }
 0x6da   :  { %v819_v13 = vrot.slane %v818_v11, 4 }
 0x6dc   :  { %v820_v14 = vadd.f32 %v819_v13, %v818_v11 }
 0x6de   :  { %v821_v18 = vrot.slane %v820_v14, 2 }
 0x6e0   :  { %v822_v24 = vadd.f32 %v821_v18, %v820_v14  ;;  %v933_v18 = vpop.f32.mrf.mxu3 }
 0x6e2   :  { %v823_v25 = vrot.slane %v822_v24, 1 }
 0x6e4   :  { %v824_v27 = vadd.f32 %v823_v25, %v822_v24 }
 0x713   :  { %v672_v19 = vpop.permute.xlu2 %671 }
 0x714   :  { %v674_v23 = vmul.f32 %v672_v19, %v2205_v26  ;;  %v1787_v26 = vld [vmem:[%s2391_s7 + $0x10] sm:$0xff]  ;;  %s836_s7 = scalar_select %p835_p3, 1, 0  ;;  %v1638_v19 = vld [vmem:[#allocation3 + $0x4] ss:$0 sm:$0xff] }
 0x716   :  { %676 = vrot.lane.b32.xlu0 %v674_v23, %s1891_s12  ;;  %v837_v12 = vstv %s836_s7  ;;  %v937_v23 = vadd.f32 %v1638_v19, %v933_v18 }
 0x717   :  { %vm838_vm14 = vcmp.eq.s32.totalorder %v837_v12, 1 }
 0x718   :  { %v1602_v24 = vmul.f32 -1.442695, %v937_v23 }
 0x71e   :  { %826 = vrot.lane.b32.xlu0 %v824_v27, %s1890_s9 }
 0x788   :  { %v677_v28 = vpop.permute.xlu0 %676 }
 0x789   :  { %v679_v29 = vsel %vm84_vm0, %v677_v28, %v2216_v52  ;;  %1592 = vmatmul.msk.f32.vlgmr.msra.gmra.mxu0 %vm84_vm0, %v677_v28 }
 0x78a   :  { %680 = vst.msk [vmem:[#allocation11 + $0x2] sm:$0x1] %vm329_vm5, %v679_v29  ;;  %1396 = vmatpush.msra.mxu0 %v1786_v22 }
 0x78c   :  { %1397 = vmatpush.msra.mxu0 %v1787_v26 }
 0x78e   :  { %1398 = vmatpush.msra.mxu0 %v2017_v16  ;;  %v792_v16 = vadd.f32 %v791_v36, %v790_v35 }
 0x790   :  { %1399 = vmatpush.msra.mxu0 %v2027_v17  ;;  %v793_v41 = vrot.slane %v792_v16, 2  ;;  %v827_v3 = vpop.permute.xlu0 %826 }
 0x792   :  { %v794_v45 = vadd.f32 %v793_v41, %v792_v16 }
 0x794   :  { %v795_v48 = vrot.slane %v794_v45, 1 }
 0x796   :  { %v796_v49 = vadd.f32 %v795_v48, %v794_v45  ;;  %v856_v48 = vld [vmem:[#allocation2 + $0x4] sm:$0x1] }
 0x806   :  { %v701_v15 = vpop.f32.mrf.mxu0 }
 0x807   :  { %v702_v32 = vadd.f32 %v701_v15, %v681_v30 }
 0x809   :  { %v1593_v33 = vmul.f32 -1.442695, %v702_v32  ;;  %1702 = vtanh.f32 %v702_v32 }
 0x80b   :  { %1704 = vpow2.f32 %v1593_v33 }
 0x80f   :  { %v1703_v34 = vpop.eup %1702 }
 0x810   :  { %726 = vrot.lane.b32.xlu2 %v1703_v34, %s1889_s17 }
 0x811   :  { %v1705_v20 = vpop.eup %1704 }
 0x812   :  { %v707_v0 = vadd.f32 1.0, %v1705_v20 }
 0x814   :  { %1706 = vrcp.f32 %v707_v0  ;;  %v719_v17 = vand.u32 2147483648, %v707_v0  ;;  %v717_v40 = vand.u32 2147483647, %v707_v0  ;;  %vm713_vm7 = vweird.f32 %v707_v0 }
 0x816   :  { %v720_v43 = vor.u32 1.1754944e-38, %v719_v17  ;;  %vm718_vm9 = vcmp.eq.f32.partialorder %v717_v40, 8.507059e+37 }
 0x81a   :  { %v1707_v57 = vpop.eup %1706 }
 0x81b   :  { %v709_v37 = vmul.f32 %v1707_v57, %v707_v0  ;;  %vm714_vm6 = vweird.f32 %v1707_v57  ;;  %v958_v0 = vstv %s2258_s20 }
 0x81c   :  { %vm715_vm8 = vmor %vm713_vm7, %vm714_vm6  ;;  %vm959_vm4 = vcmp.lt.s32.totalorder %v2132_v4, %v958_v0 }
 0x81d   :  { %v710_v38 = vsub.f32 1.0, %v709_v37 }
 0x81f   :  { %v711_v39 = vmul.f32 %v1707_v57, %v710_v38 }
 0x821   :  { %v712_v42 = vadd.f32 %v1707_v57, %v711_v39 }
 0x823   :  { %v716_v44 = vsel %vm715_vm8, %v1707_v57, %v712_v42  ;;  %v1788_v57 = vld [vmem:[%s2386_s2 + $0x20] sm:$0xff] }
 0x824   :  { %v2243_v46 = vsel %vm718_vm9, %v720_v43, %v716_v44 }
 0x825   :  { %v788_v47 = vmul.f32 1.442695, %v2243_v46  ;;  %v724_v9 = vmul.f32 %v2243_v46, %v2216_v52 }
 0x827   :  { %1708 = vpow2.f32 %v788_v47 }
 0x82d   :  { %v1709_v50 = vpop.eup %1708 }
 0x82e   :  { %813 = vrot.lane.b32.xlu1 %v1709_v50, %s1890_s9  ;;  %v797_v51 = vadd.f32 %v1709_v50, %v796_v49 }
 0x830   :  { %1710 = vrcp.f32 %v797_v51  ;;  %v809_v58 = vand.u32 2147483648, %v797_v51  ;;  %v807_v60 = vand.u32 2147483647, %v797_v51  ;;  %vm803_vm11 = vweird.f32 %v797_v51 }
 0x832   :  { %v810_v62 = vor.u32 1.1754944e-38, %v809_v58  ;;  %vm808_vm13 = vcmp.eq.f32.partialorder %v807_v60, 8.507059e+37 }
 0x836   :  { %v1711_v53 = vpop.eup %1710 }
 0x837   :  { %v799_v54 = vmul.f32 %v1711_v53, %v797_v51  ;;  %vm804_vm10 = vweird.f32 %v1711_v53 }
 0x838   :  { %vm805_vm12 = vmor %vm803_vm11, %vm804_vm10 }
 0x839   :  { %v800_v56 = vsub.f32 1.0, %v799_v54 }
 0x83b   :  { %v801_v59 = vmul.f32 %v1711_v53, %v800_v56 }
 0x83d   :  { %v802_v61 = vadd.f32 %v1711_v53, %v801_v59 }
 0x83f   :  { %v806_v31 = vsel %vm805_vm12, %v1711_v53, %v802_v61 }
 0x840   :  { %v811_v21 = vsel %vm808_vm13, %v810_v62, %v806_v31 }
 0x841   :  { %831 = vrot.lane.b32.xlu1 %v811_v21, %s1890_s9 }
 0x86a   :  { %v727_v55 = vpop.permute.xlu2 %726 }
 0x86b   :  { %v729_v63 = vmul.f32 %v727_v55, %v2243_v46 }
 0x86d   :  { %731 = vrot.lane.b32.xlu2 %v729_v63, %s1889_s17 }
 0x8a0   :  { %v814_v1 = vpop.permute.xlu1 %813 }
 0x8a1   :  { %v816_v2 = vmul.f32 %v1703_v34, %v814_v1 }
 0x8a3   :  { %v829_v5 = vadd.f32 %v827_v3, %v816_v2 }
 0x8b3   :  { %v832_v8 = vpop.permute.xlu1 %831 }
 0x8b4   :  { %v834_v6 = vmul.f32 %v832_v8, %v829_v5 }
 0x8b6   :  { %840 = vrot.lane.b32.xlu0 %v834_v6, %s1891_s12 }
 0x8c7   :  { %v732_v7 = vpop.permute.xlu2 %731 }
 0x8c8   :  { %v734_v10 = vadd.f32 %v732_v7, %v724_v9 }
 0x928   :  { %v841_v11 = vpop.permute.xlu0 %840 }
 0x929   :  { %v2254_v13 = vsel %vm838_vm14, %v734_v10, %v841_v11 }
 0x92a   :  { %1712 = vtanh.f32 %v2254_v13 }
 0x92b   :  { %1714 = vpow2.f32 %v1602_v24 }
 0x930   :  { %v1713_v14 = vpop.eup %1712 }
 0x931   :  { %846 = vrot.lane.b32.xlu1 %v1713_v14, %s1889_s17  ;;  %v1715_v25 = vpop.eup %1714 }
 0x932   :  { %v941_v27 = vadd.f32 1.0, %v1715_v25 }
 0x934   :  { %1716 = vrcp.f32 %v941_v27  ;;  %v953_v30 = vand.u32 2147483648, %v941_v27  ;;  %vm947_vm1 = vweird.f32 %v941_v27  ;;  %v951_v15 = vand.u32 2147483647, %v941_v27 }
 0x936   :  { %v954_v33 = vor.u32 1.1754944e-38, %v953_v30  ;;  %vm952_vm3 = vcmp.eq.f32.partialorder %v951_v15, 8.507059e+37 }
 0x93a   :  { %v1717_v28 = vpop.eup %1716 }
 0x93b   :  { %v943_v52 = vmul.f32 %v1717_v28, %v941_v27  ;;  %vm948_vm15 = vweird.f32 %v1717_v28 }
 0x93c   :  { %vm949_vm2 = vmor %vm947_vm1, %vm948_vm15 }
 0x93d   :  { %v944_v29 = vsub.f32 1.0, %v943_v52 }
 0x93f   :  { %v945_v22 = vmul.f32 %v1717_v28, %v944_v29 }
 0x941   :  { %v946_v26 = vadd.f32 %v1717_v28, %v945_v22 }
 0x943   :  { %v950_v32 = vsel %vm949_vm2, %v1717_v28, %v946_v26 }
 0x944   :  { %v955_v34 = vsel %vm952_vm3, %v954_v33, %v950_v32 }
 0x945   :  { %v960_v20 = vmul.f32 1.442695, %v955_v34 }
 0x947   :  { %1718 = vpow2.f32 %v960_v20  ;;  %v1012_v20 = vstv %s1011_s23 }
 0x948   :  { %vm1013_vm14 = vcmp.eq.s32.totalorder %v1012_v20, 1 }
 0x94d   :  { %v1719_v35 = vpop.eup %1718 }
 0x94e   :  { %v962_v36 = vsel %vm959_vm4, %v1719_v35, 0.0 }
 0x94f   :  { %v992_v37 = vmul.f32 %v1788_v57, %v962_v36  ;;  %v965_v56 = vsel %vm84_vm0, %v962_v36, 0.0 }
 0x950   :  { %v966_v58 = vrot.slane %v965_v56, 4 }
 0x951   :  { %v993_v16 = vsel %vm84_vm0, %v992_v37, 0.0 }
 0x952   :  { %v994_v38 = vrot.slane %v993_v16, 4  ;;  %v967_v61 = vadd.f32 %v966_v58, %v965_v56 }
 0x954   :  { %v995_v17 = vadd.f32 %v994_v38, %v993_v16  ;;  %v968_v63 = vrot.slane %v967_v61, 2  ;;  %v1108_v38 = vpop.f32.mrf.mxu1 }
 0x956   :  { %v996_v39 = vrot.slane %v995_v17, 2  ;;  %v969_v5 = vadd.f32 %v968_v63, %v967_v61 }
 0x958   :  { %v997_v42 = vadd.f32 %v996_v39, %v995_v17  ;;  %v970_v12 = vrot.slane %v969_v5, 1  ;;  %v1639_v17 = vld [vmem:[#allocation3 + $0x5] ss:$0 sm:$0xff] }
 0x959   :  { %v1112_v39 = vadd.f32 %v1639_v17, %v1108_v38 }
 0x95a   :  { %v998_v43 = vrot.slane %v997_v42, 1  ;;  %v971_v7 = vadd.f32 %v970_v12, %v969_v5  ;;  %v1031_v12 = vld [vmem:[#allocation2 + $0x5] sm:$0x1] }
 0x95c   :  { %v999_v44 = vadd.f32 %v998_v43, %v997_v42 }
 0x9a3   :  { %v847_v40 = vpop.permute.xlu1 %846 }
 0x9a4   :  { %v849_v41 = vmul.f32 %v847_v40, %v2243_v46  ;;  %v1608_v40 = vmul.f32 -1.442695, %v1112_v39 }
 0x9a6   :  { %851 = vrot.lane.b32.xlu2 %v849_v41, %s1891_s12 }
 0x9ae   :  { %1001 = vrot.lane.b32.xlu2 %v999_v44, %s1890_s9 }
 0xa00   :  { %v852_v45 = vpop.permute.xlu2 %851 }
 0xa01   :  { %v854_v47 = vsel %vm84_vm0, %v852_v45, %v2254_v13  ;;  %1598 = vmatmul.msk.f32.vlgmr.msra.gmra.mxu2 %vm84_vm0, %v852_v45 }
 0xa02   :  { %855 = vst.msk [vmem:[#allocation11 + $0x3] sm:$0x1] %vm329_vm5, %v854_v47 }
 0xa08   :  { %v1002_v15 = vpop.permute.xlu2 %1001 }
 0xa84   :  { %v876_v49 = vpop.f32.mrf.mxu2 }
 0xa85   :  { %v877_v50 = vadd.f32 %v876_v49, %v856_v48 }
 0xa87   :  { %v1599_v51 = vmul.f32 -1.442695, %v877_v50  ;;  %1720 = vtanh.f32 %v877_v50 }
 0xa89   :  { %1722 = vpow2.f32 %v1599_v51 }
 0xa8d   :  { %v1721_v46 = vpop.eup %1720 }
 0xa8e   :  { %901 = vrot.lane.b32.xlu1 %v1721_v46, %s1889_s17 }
 0xa8f   :  { %v1723_v53 = vpop.eup %1722 }
 0xa90   :  { %v882_v54 = vadd.f32 1.0, %v1723_v53 }
 0xa92   :  { %1724 = vrcp.f32 %v882_v54  ;;  %v894_v31 = vand.u32 2147483648, %v882_v54  ;;  %v892_v55 = vand.u32 2147483647, %v882_v54  ;;  %vm888_vm7 = vweird.f32 %v882_v54 }
 0xa94   :  { %v895_v2 = vor.u32 1.1754944e-38, %v894_v31  ;;  %vm893_vm9 = vcmp.eq.f32.partialorder %v892_v55, 8.507059e+37 }
 0xa98   :  { %v1725_v59 = vpop.eup %1724 }
 0xa99   :  { %v884_v60 = vmul.f32 %v1725_v59, %v882_v54  ;;  %vm889_vm6 = vweird.f32 %v1725_v59  ;;  %v1133_v54 = vstv %s2290_s24 }
 0xa9a   :  { %vm890_vm8 = vmor %vm888_vm7, %vm889_vm6  ;;  %vm1134_vm4 = vcmp.lt.s32.totalorder %v2132_v4, %v1133_v54 }
 0xa9b   :  { %v885_v62 = vsub.f32 1.0, %v884_v60 }
 0xa9d   :  { %v886_v21 = vmul.f32 %v1725_v59, %v885_v62 }
 0xa9f   :  { %v887_v1 = vadd.f32 %v1725_v59, %v886_v21 }
 0xaa1   :  { %v891_v3 = vsel %vm890_vm8, %v1725_v59, %v887_v1  ;;  %v1789_v59 = vld [vmem:[%s2386_s2 + $0x28] sm:$0xff] }
 0xaa2   :  { %v2275_v8 = vsel %vm893_vm9, %v895_v2, %v891_v3 }
 0xaa3   :  { %v963_v6 = vmul.f32 1.442695, %v2275_v8  ;;  %v899_v35 = vmul.f32 %v2275_v8, %v2254_v13 }
 0xaa5   :  { %1726 = vpow2.f32 %v963_v6 }
 0xaab   :  { %v1727_v9 = vpop.eup %1726 }
 0xaac   :  { %988 = vrot.lane.b32.xlu0 %v1727_v9, %s1890_s9  ;;  %v972_v10 = vadd.f32 %v1727_v9, %v971_v7 }
 0xaae   :  { %1728 = vrcp.f32 %v972_v10  ;;  %v984_v19 = vand.u32 2147483648, %v972_v10  ;;  %v982_v24 = vand.u32 2147483647, %v972_v10  ;;  %vm978_vm11 = vweird.f32 %v972_v10 }
 0xab0   :  { %v985_v27 = vor.u32 1.1754944e-38, %v984_v19  ;;  %vm983_vm13 = vcmp.eq.f32.partialorder %v982_v24, 8.507059e+37 }
 0xab4   :  { %v1729_v11 = vpop.eup %1728 }
 0xab5   :  { %v974_v14 = vmul.f32 %v1729_v11, %v972_v10  ;;  %vm979_vm10 = vweird.f32 %v1729_v11 }
 0xab6   :  { %vm980_vm12 = vmor %vm978_vm11, %vm979_vm10 }
 0xab7   :  { %v975_v18 = vsub.f32 1.0, %v974_v14 }
 0xab9   :  { %v976_v23 = vmul.f32 %v1729_v11, %v975_v18 }
 0xabb   :  { %v977_v25 = vadd.f32 %v1729_v11, %v976_v23 }
 0xabd   :  { %v981_v28 = vsel %vm980_vm12, %v1729_v11, %v977_v25 }
 0xabe   :  { %v986_v52 = vsel %vm983_vm13, %v985_v27, %v981_v28 }
 0xabf   :  { %1006 = vrot.lane.b32.xlu0 %v986_v52, %s1890_s9 }
 0xb00   :  { %v902_v29 = vpop.permute.xlu1 %901 }
 0xb01   :  { %v904_v22 = vmul.f32 %v902_v29, %v2275_v8 }
 0xb03   :  { %906 = vrot.lane.b32.xlu1 %v904_v22, %s1889_s17 }
 0xb1e   :  { %v989_v26 = vpop.permute.xlu0 %988 }
 0xb1f   :  { %v991_v30 = vmul.f32 %v1721_v46, %v989_v26 }
 0xb21   :  { %v1004_v32 = vadd.f32 %v1002_v15, %v991_v30 }
 0xb31   :  { %v1007_v33 = vpop.permute.xlu0 %1006 }
 0xb32   :  { %v1009_v34 = vmul.f32 %v1007_v33, %v1004_v32 }
 0xb34   :  { %1015 = vrot.lane.b32.xlu2 %v1009_v34, %s1891_s12 }
 0xb75   :  { %v907_v0 = vpop.permute.xlu1 %906 }
 0xb76   :  { %v909_v36 = vadd.f32 %v907_v0, %v899_v35 }
 0xb8e   :  { %v1016_v57 = vpop.permute.xlu2 %1015 }
 0xb8f   :  { %v2286_v37 = vsel %vm1013_vm14, %v909_v36, %v1016_v57 }
 0xb90   :  { %1730 = vtanh.f32 %v2286_v37 }
 0xb91   :  { %1732 = vpow2.f32 %v1608_v40 }
 0xb96   :  { %v1731_v16 = vpop.eup %1730 }
 0xb97   :  { %1021 = vrot.lane.b32.xlu0 %v1731_v16, %s1889_s17  ;;  %v1733_v41 = vpop.eup %1732 }
 0xb98   :  { %v1116_v42 = vadd.f32 1.0, %v1733_v41 }
 0xb9a   :  { %1734 = vrcp.f32 %v1116_v42  ;;  %v1128_v48 = vand.u32 2147483648, %v1116_v42  ;;  %vm1122_vm1 = vweird.f32 %v1116_v42  ;;  %v1126_v49 = vand.u32 2147483647, %v1116_v42 }
 0xb9c   :  { %v1129_v51 = vor.u32 1.1754944e-38, %v1128_v48  ;;  %vm1127_vm3 = vcmp.eq.f32.partialorder %v1126_v49, 8.507059e+37 }
 0xba0   :  { %v1735_v43 = vpop.eup %1734 }
 0xba1   :  { %v1118_v13 = vmul.f32 %v1735_v43, %v1116_v42  ;;  %vm1123_vm15 = vweird.f32 %v1735_v43 }
 0xba2   :  { %vm1124_vm2 = vmor %vm1122_vm1, %vm1123_vm15 }
 0xba3   :  { %v1119_v44 = vsub.f32 1.0, %v1118_v13 }
 0xba5   :  { %v1120_v45 = vmul.f32 %v1735_v43, %v1119_v44 }
 0xba7   :  { %v1121_v47 = vadd.f32 %v1735_v43, %v1120_v45 }
 0xba9   :  { %v1125_v50 = vsel %vm1124_vm2, %v1735_v43, %v1121_v47 }
 0xbaa   :  { %v1130_v46 = vsel %vm1127_vm3, %v1129_v51, %v1125_v50 }
 0xbab   :  { %v1135_v53 = vmul.f32 1.442695, %v1130_v46 }
 0xbad   :  { %1736 = vpow2.f32 %v1135_v53  ;;  %v1187_v53 = vstv %s1186_s27 }
 0xbae   :  { %vm1188_vm14 = vcmp.eq.s32.totalorder %v1187_v53, 1 }
 0xbb3   :  { %v1737_v56 = vpop.eup %1736 }
 0xbb4   :  { %v1137_v58 = vsel %vm1134_vm4, %v1737_v56, 0.0 }
 0xbb5   :  { %v1167_v60 = vmul.f32 %v1789_v59, %v1137_v58  ;;  %v1140_v18 = vsel %vm84_vm0, %v1137_v58, 0.0 }
 0xbb6   :  { %v1141_v19 = vrot.slane %v1140_v18, 4 }
 0xbb7   :  { %v1168_v61 = vsel %vm84_vm0, %v1167_v60, 0.0 }
 0xbb8   :  { %v1169_v62 = vrot.slane %v1168_v61, 4  ;;  %v1142_v25 = vadd.f32 %v1141_v19, %v1140_v18 }
 0xbba   :  { %v1170_v31 = vadd.f32 %v1169_v62, %v1168_v61  ;;  %v1143_v22 = vrot.slane %v1142_v25, 2  ;;  %v1283_v62 = vpop.f32.mrf.mxu3 }
 0xbbc   :  { %v1171_v21 = vrot.slane %v1170_v31, 2  ;;  %v1144_v32 = vadd.f32 %v1143_v22, %v1142_v25 }
 0xbbe   :  { %v1172_v1 = vadd.f32 %v1171_v21, %v1170_v31  ;;  %v1145_v20 = vrot.slane %v1144_v32, 1  ;;  %v1640_v31 = vld [vmem:[#allocation3 + $0x6] ss:$0 sm:$0xff] }
 0xbbf   :  { %v1287_v21 = vadd.f32 %v1640_v31, %v1283_v62 }
 0xbc0   :  { %v1173_v2 = vrot.slane %v1172_v1, 1  ;;  %v1146_v0 = vadd.f32 %v1145_v20, %v1144_v32  ;;  %v1206_v20 = vld [vmem:[#allocation2 + $0x6] sm:$0x1] }
 0xbc2   :  { %v1174_v3 = vadd.f32 %v1173_v2, %v1172_v1 }
 0xc09   :  { %v1022_v55 = vpop.permute.xlu0 %1021 }
 0xc0a   :  { %v1024_v63 = vmul.f32 %v1022_v55, %v2275_v8  ;;  %v1614_v55 = vmul.f32 -1.442695, %v1287_v21 }
 0xc0c   :  { %1026 = vrot.lane.b32.xlu1 %v1024_v63, %s1891_s12 }
 0xc14   :  { %1176 = vrot.lane.b32.xlu1 %v1174_v3, %s1890_s9 }
 0xc7e   :  { %v1027_v5 = vpop.permute.xlu1 %1026 }
 0xc7f   :  { %v1029_v6 = vsel %vm84_vm0, %v1027_v5, %v2286_v37  ;;  %1604 = vmatmul.msk.f32.vlgmr.msrb.gmra.mxu0 %vm84_vm0, %v1027_v5 }
 0xc80   :  { %1030 = vst.msk [vmem:[#allocation11 + $0x4] sm:$0x1] %vm329_vm5, %v1029_v6 }
 0xc86   :  { %v1177_v49 = vpop.permute.xlu1 %1176 }
 0xcfc   :  { %v1051_v7 = vpop.f32.mrf.mxu0 }
 0xcfd   :  { %v1052_v9 = vadd.f32 %v1051_v7, %v1031_v12 }
 0xcff   :  { %v1605_v10 = vmul.f32 -1.442695, %v1052_v9  ;;  %1738 = vtanh.f32 %v1052_v9 }
 0xd01   :  { %1740 = vpow2.f32 %v1605_v10 }
 0xd05   :  { %v1739_v8 = vpop.eup %1738 }
 0xd06   :  { %1076 = vrot.lane.b32.xlu0 %v1739_v8, %s1889_s17 }
 0xd07   :  { %v1741_v11 = vpop.eup %1740 }
 0xd08   :  { %v1057_v14 = vadd.f32 1.0, %v1741_v11 }
 0xd0a   :  { %1742 = vrcp.f32 %v1057_v14  ;;  %v1069_v28 = vand.u32 2147483648, %v1057_v14  ;;  %v1067_v29 = vand.u32 2147483647, %v1057_v14  ;;  %vm1063_vm7 = vweird.f32 %v1057_v14 }
 0xd0c   :  { %v1070_v30 = vor.u32 1.1754944e-38, %v1069_v28  ;;  %vm1068_vm9 = vcmp.eq.f32.partialorder %v1067_v29, 8.507059e+37 }
 0xd10   :  { %v1743_v23 = vpop.eup %1742 }
 0xd11   :  { %v1059_v24 = vmul.f32 %v1743_v23, %v1057_v14  ;;  %vm1064_vm6 = vweird.f32 %v1743_v23  ;;  %v1308_v14 = vstv %s2322_s0 }
 0xd12   :  { %vm1065_vm8 = vmor %vm1063_vm7, %vm1064_vm6  ;;  %vm1309_vm4 = vcmp.lt.s32.totalorder %v2132_v4, %v1308_v14 }
 0xd13   :  { %v1060_v27 = vsub.f32 1.0, %v1059_v24 }
 0xd15   :  { %v1061_v52 = vmul.f32 %v1743_v23, %v1060_v27 }
 0xd17   :  { %v1062_v26 = vadd.f32 %v1743_v23, %v1061_v52 }
 0xd19   :  { %v1066_v15 = vsel %vm1065_vm8, %v1743_v23, %v1062_v26  ;;  %v1790_v23 = vld [vmem:[%s2386_s2 + $0x30] sm:$0xff] }
 0xd1a   :  { %v2307_v33 = vsel %vm1068_vm9, %v1070_v30, %v1066_v15 }
 0xd1b   :  { %v1138_v34 = vmul.f32 1.442695, %v2307_v33  ;;  %v1074_v56 = vmul.f32 %v2307_v33, %v2286_v37 }
 0xd1d   :  { %1744 = vpow2.f32 %v1138_v34 }
 0xd23   :  { %v1745_v35 = vpop.eup %1744 }
 0xd24   :  { %1163 = vrot.lane.b32.xlu2 %v1745_v35, %s1890_s9  ;;  %v1147_v36 = vadd.f32 %v1745_v35, %v1146_v0 }
 0xd26   :  { %1746 = vrcp.f32 %v1147_v36  ;;  %v1159_v17 = vand.u32 2147483648, %v1147_v36  ;;  %v1157_v40 = vand.u32 2147483647, %v1147_v36  ;;  %vm1153_vm11 = vweird.f32 %v1147_v36 }
 0xd28   :  { %v1160_v42 = vor.u32 1.1754944e-38, %v1159_v17  ;;  %vm1158_vm13 = vcmp.eq.f32.partialorder %v1157_v40, 8.507059e+37 }
 0xd2c   :  { %v1747_v57 = vpop.eup %1746 }
 0xd2d   :  { %v1149_v16 = vmul.f32 %v1747_v57, %v1147_v36  ;;  %vm1154_vm10 = vweird.f32 %v1747_v57 }
 0xd2e   :  { %vm1155_vm12 = vmor %vm1153_vm11, %vm1154_vm10 }
 0xd2f   :  { %v1150_v38 = vsub.f32 1.0, %v1149_v16 }
 0xd31   :  { %v1151_v39 = vmul.f32 %v1747_v57, %v1150_v38 }
 0xd33   :  { %v1152_v41 = vadd.f32 %v1747_v57, %v1151_v39 }
 0xd35   :  { %v1156_v43 = vsel %vm1155_vm12, %v1747_v57, %v1152_v41 }
 0xd36   :  { %v1161_v13 = vsel %vm1158_vm13, %v1160_v42, %v1156_v43 }
 0xd37   :  { %1181 = vrot.lane.b32.xlu2 %v1161_v13, %s1890_s9 }
 0xd78   :  { %v1077_v44 = vpop.permute.xlu0 %1076 }
 0xd79   :  { %v1079_v45 = vmul.f32 %v1077_v44, %v2307_v33 }
 0xd7b   :  { %1081 = vrot.lane.b32.xlu0 %v1079_v45, %s1889_s17 }
 0xd7e   :  { %v1164_v47 = vpop.permute.xlu2 %1163 }
 0xd7f   :  { %v1166_v48 = vmul.f32 %v1739_v8, %v1164_v47 }
 0xd81   :  { %v1179_v50 = vadd.f32 %v1177_v49, %v1166_v48 }
 0xd91   :  { %v1182_v51 = vpop.permute.xlu2 %1181 }
 0xd92   :  { %v1184_v46 = vmul.f32 %v1182_v51, %v1179_v50 }
 0xd94   :  { %1190 = vrot.lane.b32.xlu1 %v1184_v46, %s1891_s12 }
 0xded   :  { %v1082_v54 = vpop.permute.xlu0 %1081 }
 0xdee   :  { %v1084_v58 = vadd.f32 %v1082_v54, %v1074_v56 }
 0xe06   :  { %v1191_v59 = vpop.permute.xlu1 %1190 }
 0xe07   :  { %v2318_v60 = vsel %vm1188_vm14, %v1084_v58, %v1191_v59 }
 0xe08   :  { %1748 = vtanh.f32 %v2318_v60 }
 0xe09   :  { %1750 = vpow2.f32 %v1614_v55 }
 0xe0e   :  { %v1749_v61 = vpop.eup %1748 }
 0xe0f   :  { %1196 = vrot.lane.b32.xlu2 %v1749_v61, %s1889_s17  ;;  %v1751_v63 = vpop.eup %1750 }
 0xe10   :  { %v1291_v1 = vadd.f32 1.0, %v1751_v63 }
 0xe12   :  { %1752 = vrcp.f32 %v1291_v1  ;;  %v1303_v12 = vand.u32 2147483648, %v1291_v1  ;;  %vm1297_vm1 = vweird.f32 %v1291_v1  ;;  %v1301_v7 = vand.u32 2147483647, %v1291_v1 }
 0xe14   :  { %v1304_v10 = vor.u32 1.1754944e-38, %v1303_v12  ;;  %vm1302_vm3 = vcmp.eq.f32.partialorder %v1301_v7, 8.507059e+37 }
 0xe18   :  { %v1753_v2 = vpop.eup %1752 }
 0xe19   :  { %v1293_v37 = vmul.f32 %v1753_v2, %v1291_v1  ;;  %vm1298_vm15 = vweird.f32 %v1753_v2 }
 0xe1a   :  { %vm1299_vm2 = vmor %vm1297_vm1, %vm1298_vm15 }
 0xe1b   :  { %v1294_v3 = vsub.f32 1.0, %v1293_v37 }
 0xe1d   :  { %v1295_v5 = vmul.f32 %v1753_v2, %v1294_v3 }
 0xe1f   :  { %v1296_v6 = vadd.f32 %v1753_v2, %v1295_v5 }
 0xe21   :  { %v1300_v9 = vsel %vm1299_vm2, %v1753_v2, %v1296_v6 }
 0xe22   :  { %v1305_v8 = vsel %vm1302_vm3, %v1304_v10, %v1300_v9 }
 0xe23   :  { %v1310_v11 = vmul.f32 1.442695, %v1305_v8 }
 0xe25   :  { %1754 = vpow2.f32 %v1310_v11  ;;  %v1362_v11 = vstv %s1361_s5 }
 0xe26   :  { %vm1363_vm14 = vcmp.eq.s32.totalorder %v1362_v11, 1 }
 0xe2b   :  { %v1755_v18 = vpop.eup %1754 }
 0xe2c   :  { %v1312_v19 = vsel %vm1309_vm4, %v1755_v18, 0.0 }
 0xe2d   :  { %v1342_v24 = vmul.f32 %v1790_v23, %v1312_v19  ;;  %v1315_v38 = vsel %vm84_vm0, %v1312_v19, 0.0 }
 0xe2e   :  { %v1316_v17 = vrot.slane %v1315_v38, 4 }
 0xe2f   :  { %v1343_v25 = vsel %vm84_vm0, %v1342_v24, 0.0 }
 0xe30   :  { %v1344_v27 = vrot.slane %v1343_v25, 4  ;;  %v1317_v41 = vadd.f32 %v1316_v17, %v1315_v38 }
 0xe32   :  { %v1345_v28 = vadd.f32 %v1344_v27, %v1343_v25  ;;  %v1318_v45 = vrot.slane %v1317_v41, 2  ;;  %v1458_v27 = vpop.f32.mrf.mxu1 }
 0xe34   :  { %v1346_v52 = vrot.slane %v1345_v28, 2  ;;  %v1319_v50 = vadd.f32 %v1318_v45, %v1317_v41 }
 0xe36   :  { %v1347_v26 = vadd.f32 %v1346_v52, %v1345_v28  ;;  %v1320_v53 = vrot.slane %v1319_v50, 1  ;;  %v1641_v28 = vld [vmem:[#allocation3 + $0x7] ss:$0 sm:$0xff] }
 0xe37   :  { %v1462_v52 = vadd.f32 %v1641_v28, %v1458_v27 }
 0xe38   :  { %v1348_v30 = vrot.slane %v1347_v26, 1  ;;  %v1321_v54 = vadd.f32 %v1320_v53, %v1319_v50 }
 0xe3a   :  { %v1349_v15 = vadd.f32 %v1348_v30, %v1347_v26 }
 0xe69   :  { %v1197_v29 = vpop.permute.xlu2 %1196 }
 0xe6a   :  { %v1199_v22 = vmul.f32 %v1197_v29, %v2307_v33  ;;  %v1620_v29 = vmul.f32 -1.442695, %v1462_v52 }
 0xe6c   :  { %1201 = vrot.lane.b32.xlu0 %v1199_v22, %s1891_s12 }
 0xe74   :  { %1351 = vrot.lane.b32.xlu0 %v1349_v15, %s1890_s9 }
 0xede   :  { %v1202_v32 = vpop.permute.xlu0 %1201 }
 0xedf   :  { %v1204_v34 = vsel %vm84_vm0, %v1202_v32, %v2318_v60  ;;  %1610 = vmatmul.msk.f32.vlgmr.msrb.gmra.mxu2 %vm84_vm0, %v1202_v32 }
 0xee0   :  { %1205 = vst.msk [vmem:[#allocation11 + $0x5] sm:$0x1] %vm329_vm5, %v1204_v34 }
 0xee6   :  { %v1352_v7 = vpop.permute.xlu0 %1351 }
 0xf62   :  { %v1226_v0 = vpop.f32.mrf.mxu2 }
 0xf63   :  { %v1227_v35 = vadd.f32 %v1226_v0, %v1206_v20 }
 0xf65   :  { %v1611_v36 = vmul.f32 -1.442695, %v1227_v35  ;;  %1756 = vtanh.f32 %v1227_v35 }
 0xf67   :  { %1758 = vpow2.f32 %v1611_v36 }
 0xf6b   :  { %v1757_v33 = vpop.eup %1756 }
 0xf6c   :  { %1251 = vrot.lane.b32.xlu2 %v1757_v33, %s1889_s17 }
 0xf6d   :  { %v1759_v57 = vpop.eup %1758 }
 0xf6e   :  { %v1232_v16 = vadd.f32 1.0, %v1759_v57 }
 0xf70   :  { %1760 = vrcp.f32 %v1232_v16  ;;  %v1244_v43 = vand.u32 2147483648, %v1232_v16  ;;  %v1242_v44 = vand.u32 2147483647, %v1232_v16  ;;  %vm1238_vm7 = vweird.f32 %v1232_v16 }
 0xf72   :  { %v1245_v48 = vor.u32 1.1754944e-38, %v1244_v43  ;;  %vm1243_vm9 = vcmp.eq.f32.partialorder %v1242_v44, 8.507059e+37 }
 0xf76   :  { %v1761_v39 = vpop.eup %1760 }
 0xf77   :  { %v1234_v40 = vmul.f32 %v1761_v39, %v1232_v16  ;;  %vm1239_vm6 = vweird.f32 %v1761_v39  ;;  %v1483_v16 = vstv %s2354_s30 }
 0xf78   :  { %vm1240_vm8 = vmor %vm1238_vm7, %vm1239_vm6  ;;  %vm1484_vm4 = vcmp.lt.s32.totalorder %v2132_v4, %v1483_v16 }
 0xf79   :  { %v1235_v42 = vsub.f32 1.0, %v1234_v40 }
 0xf7b   :  { %v1236_v13 = vmul.f32 %v1761_v39, %v1235_v42 }
 0xf7d   :  { %v1237_v47 = vadd.f32 %v1761_v39, %v1236_v13 }
 0xf7f   :  { %v1241_v49 = vsel %vm1240_vm8, %v1761_v39, %v1237_v47  ;;  %v1791_v39 = vld [vmem:[%s2386_s2 + $0x38] sm:$0xff]  ;;  %s1536_s2 = scalar_select %p1535_p7, 1, 0 }
 0xf80   :  { %v2339_v51 = vsel %vm1243_vm9, %v1245_v48, %v1241_v49 }
 0xf81   :  { %v1313_v46 = vmul.f32 1.442695, %v2339_v51  ;;  %v1249_v18 = vmul.f32 %v2339_v51, %v2318_v60 }
 0xf83   :  { %1762 = vpow2.f32 %v1313_v46  ;;  %v1381_v46 = vld [vmem:[#allocation2 + $0x7] sm:$0x1] }
 0xf89   :  { %v1763_v56 = vpop.eup %1762 }
 0xf8a   :  { %1338 = vrot.lane.b32.xlu1 %v1763_v56, %s1890_s9  ;;  %v1322_v58 = vadd.f32 %v1763_v56, %v1321_v54 }
 0xf8c   :  { %1764 = vrcp.f32 %v1322_v58  ;;  %v1334_v31 = vand.u32 2147483648, %v1322_v58  ;;  %v1332_v55 = vand.u32 2147483647, %v1322_v58  ;;  %vm1328_vm11 = vweird.f32 %v1322_v58 }
 0xf8e   :  { %v1335_v1 = vor.u32 1.1754944e-38, %v1334_v31  ;;  %vm1333_vm13 = vcmp.eq.f32.partialorder %v1332_v55, 8.507059e+37 }
 0xf92   :  { %v1765_v59 = vpop.eup %1764 }
 0xf93   :  { %v1324_v61 = vmul.f32 %v1765_v59, %v1322_v58  ;;  %vm1329_vm10 = vweird.f32 %v1765_v59 }
 0xf94   :  { %vm1330_vm12 = vmor %vm1328_vm11, %vm1329_vm10 }
 0xf95   :  { %v1325_v62 = vsub.f32 1.0, %v1324_v61 }
 0xf97   :  { %v1326_v21 = vmul.f32 %v1765_v59, %v1325_v62 }
 0xf99   :  { %v1327_v63 = vadd.f32 %v1765_v59, %v1326_v21 }
 0xf9b   :  { %v1331_v2 = vsel %vm1330_vm12, %v1765_v59, %v1327_v63 }
 0xf9c   :  { %v1336_v37 = vsel %vm1333_vm13, %v1335_v1, %v1331_v2 }
 0xf9d   :  { %1356 = vrot.lane.b32.xlu1 %v1336_v37, %s1890_s9 }
 0xfc6   :  { %v1252_v3 = vpop.permute.xlu2 %1251 }
 0xfc7   :  { %v1254_v5 = vmul.f32 %v1252_v3, %v2339_v51 }
 0xfc9   :  { %1256 = vrot.lane.b32.xlu2 %v1254_v5, %s1889_s17 }
 0xffc   :  { %v1339_v6 = vpop.permute.xlu1 %1338 }
 0xffd   :  { %v1341_v12 = vmul.f32 %v1757_v33, %v1339_v6 }
 0xfff   :  { %v1354_v9 = vadd.f32 %v1352_v7, %v1341_v12 }
0x100f   :  { %v1357_v10 = vpop.permute.xlu1 %1356 }
0x1010   :  { %v1359_v8 = vmul.f32 %v1357_v10, %v1354_v9 }
0x1012   :  { %1365 = vrot.lane.b32.xlu0 %v1359_v8, %s1891_s12 }
0x1023   :  { %v1257_v14 = vpop.permute.xlu2 %1256 }
0x1024   :  { %v1259_v19 = vadd.f32 %v1257_v14, %v1249_v18 }
0x1084   :  { %v1366_v23 = vpop.permute.xlu0 %1365 }
0x1085   :  { %v2350_v24 = vsel %vm1363_vm14, %v1259_v19, %v1366_v23 }
0x1086   :  { %1766 = vtanh.f32 %v2350_v24 }
0x1087   :  { %1768 = vpow2.f32 %v1620_v29 }
0x108c   :  { %v1767_v25 = vpop.eup %1766 }
0x108d   :  { %1371 = vrot.lane.b32.xlu1 %v1767_v25, %s1889_s17  ;;  %v1769_v22 = vpop.eup %1768 }
0x108e   :  { %v1466_v26 = vadd.f32 1.0, %v1769_v22 }
0x1090   :  { %1770 = vrcp.f32 %v1466_v26  ;;  %v1478_v20 = vand.u32 2147483648, %v1466_v26  ;;  %vm1472_vm1 = vweird.f32 %v1466_v26  ;;  %v1476_v0 = vand.u32 2147483647, %v1466_v26 }
0x1092   :  { %v1479_v36 = vor.u32 1.1754944e-38, %v1478_v20  ;;  %vm1477_vm3 = vcmp.eq.f32.partialorder %v1476_v0, 8.507059e+37 }
0x1096   :  { %v1771_v30 = vpop.eup %1770 }
0x1097   :  { %v1468_v60 = vmul.f32 %v1771_v30, %v1466_v26  ;;  %vm1473_vm15 = vweird.f32 %v1771_v30 }
0x1098   :  { %vm1474_vm2 = vmor %vm1472_vm1, %vm1473_vm15 }
0x1099   :  { %v1469_v15 = vsub.f32 1.0, %v1468_v60 }
0x109b   :  { %v1470_v32 = vmul.f32 %v1771_v30, %v1469_v15 }
0x109d   :  { %v1471_v34 = vadd.f32 %v1771_v30, %v1470_v32 }
0x109f   :  { %v1475_v35 = vsel %vm1474_vm2, %v1771_v30, %v1471_v34 }
0x10a0   :  { %v1480_v33 = vsel %vm1477_vm3, %v1479_v36, %v1475_v35 }
0x10a1   :  { %v1485_v57 = vmul.f32 1.442695, %v1480_v33  ;;  %v1537_v33 = vstv %s1536_s2 }
0x10a2   :  { %vm1538_vm14 = vcmp.eq.s32.totalorder %v1537_v33, 1 }
0x10a3   :  { %1772 = vpow2.f32 %v1485_v57 }
0x10a9   :  { %v1773_v38 = vpop.eup %1772 }
0x10aa   :  { %v1487_v17 = vsel %vm1484_vm4, %v1773_v38, 0.0 }
0x10ab   :  { %v1517_v40 = vmul.f32 %v1791_v39, %v1487_v17  ;;  %v1490_v61 = vsel %vm84_vm0, %v1487_v17, 0.0 }
0x10ac   :  { %v1491_v62 = vrot.slane %v1490_v61, 4 }
0x10ad   :  { %v1518_v41 = vsel %vm84_vm0, %v1517_v40, 0.0 }
0x10ae   :  { %v1519_v42 = vrot.slane %v1518_v41, 4  ;;  %v1492_v55 = vadd.f32 %v1491_v62, %v1490_v61 }
0x10b0   :  { %v1520_v43 = vadd.f32 %v1519_v42, %v1518_v41  ;;  %v1493_v3 = vrot.slane %v1492_v55, 2 }
0x10b2   :  { %v1521_v13 = vrot.slane %v1520_v43, 2  ;;  %v1494_v7 = vadd.f32 %v1493_v3, %v1492_v55 }
0x10b4   :  { %v1522_v47 = vadd.f32 %v1521_v13, %v1520_v43  ;;  %v1495_v8 = vrot.slane %v1494_v7, 1 }
0x10b6   :  { %v1523_v48 = vrot.slane %v1522_v47, 1  ;;  %v1496_v11 = vadd.f32 %v1495_v8, %v1494_v7 }
0x10b8   :  { %v1524_v49 = vadd.f32 %v1523_v48, %v1522_v47 }
0x10ff   :  { %v1372_v44 = vpop.permute.xlu1 %1371 }
0x1100   :  { %v1374_v45 = vmul.f32 %v1372_v44, %v2339_v51 }
0x1102   :  { %1376 = vrot.lane.b32.xlu2 %v1374_v45, %s1891_s12 }
0x110a   :  { %1526 = vrot.lane.b32.xlu2 %v1524_v49, %s1890_s9 }
0x115c   :  { %v1377_v4 = vpop.permute.xlu2 %1376 }
0x115d   :  { %v1379_v50 = vsel %vm84_vm0, %v1377_v4, %v2350_v24  ;;  %1616 = vmatmul.msk.f32.vlgmr.msra.gmra.mxu0 %vm84_vm0, %v1377_v4 }
0x115e   :  { %1380 = vst.msk [vmem:[#allocation11 + $0x6] sm:$0x1] %vm329_vm5, %v1379_v50 }
0x1164   :  { %v1527_v20 = vpop.permute.xlu2 %1526 }
0x11da   :  { %v1401_v53 = vpop.f32.mrf.mxu0 }
0x11db   :  { %v1402_v54 = vadd.f32 %v1401_v53, %v1381_v46 }
0x11dd   :  { %v1617_v56 = vmul.f32 -1.442695, %v1402_v54  ;;  %1774 = vtanh.f32 %v1402_v54 }
0x11df   :  { %1776 = vpow2.f32 %v1617_v56 }
0x11e3   :  { %v1775_v51 = vpop.eup %1774 }
0x11e4   :  { %1426 = vrot.lane.b32.xlu1 %v1775_v51, %s1889_s17 }
0x11e5   :  { %v1777_v58 = vpop.eup %1776 }
0x11e6   :  { %v1407_v59 = vadd.f32 1.0, %v1777_v58 }
0x11e8   :  { %1778 = vrcp.f32 %v1407_v59  ;;  %v1419_v1 = vand.u32 2147483648, %v1407_v59  ;;  %v1417_v37 = vand.u32 2147483647, %v1407_v59  ;;  %vm1413_vm7 = vweird.f32 %v1407_v59 }
0x11ea   :  { %v1420_v6 = vor.u32 1.1754944e-38, %v1419_v1  ;;  %vm1418_vm9 = vcmp.eq.f32.partialorder %v1417_v37, 8.507059e+37 }
0x11ee   :  { %v1779_v31 = vpop.eup %1778 }
0x11ef   :  { %v1409_v21 = vmul.f32 %v1779_v31, %v1407_v59  ;;  %vm1414_vm6 = vweird.f32 %v1779_v31 }
0x11f0   :  { %vm1415_vm8 = vmor %vm1413_vm7, %vm1414_vm6 }
0x11f1   :  { %v1410_v63 = vsub.f32 1.0, %v1409_v21 }
0x11f3   :  { %v1411_v2 = vmul.f32 %v1779_v31, %v1410_v63 }
0x11f5   :  { %v1412_v5 = vadd.f32 %v1779_v31, %v1411_v2 }
0x11f7   :  { %v1416_v12 = vsel %vm1415_vm8, %v1779_v31, %v1412_v5 }
0x11f8   :  { %v1421_v9 = vsel %vm1418_vm9, %v1420_v6, %v1416_v12 }
0x11f9   :  { %v1488_v10 = vmul.f32 1.442695, %v1421_v9  ;;  %v1424_v16 = vmul.f32 %v1421_v9, %v2350_v24 }
0x11fb   :  { %1780 = vpow2.f32 %v1488_v10 }
0x1201   :  { %v1781_v14 = vpop.eup %1780 }
0x1202   :  { %1513 = vrot.lane.b32.xlu0 %v1781_v14, %s1890_s9  ;;  %v1497_v18 = vadd.f32 %v1781_v14, %v1496_v11 }
0x1204   :  { %1782 = vrcp.f32 %v1497_v18  ;;  %v1509_v27 = vand.u32 2147483648, %v1497_v18  ;;  %v1507_v52 = vand.u32 2147483647, %v1497_v18  ;;  %vm1503_vm11 = vweird.f32 %v1497_v18 }
0x1206   :  { %v1510_v22 = vor.u32 1.1754944e-38, %v1509_v27  ;;  %vm1508_vm13 = vcmp.eq.f32.partialorder %v1507_v52, 8.507059e+37 }
0x120a   :  { %v1783_v19 = vpop.eup %1782 }
0x120b   :  { %v1499_v23 = vmul.f32 %v1783_v19, %v1497_v18  ;;  %vm1504_vm10 = vweird.f32 %v1783_v19 }
0x120c   :  { %vm1505_vm12 = vmor %vm1503_vm11, %vm1504_vm10 }
0x120d   :  { %v1500_v25 = vsub.f32 1.0, %v1499_v23 }
0x120f   :  { %v1501_v28 = vmul.f32 %v1783_v19, %v1500_v25 }
0x1211   :  { %v1502_v29 = vadd.f32 %v1783_v19, %v1501_v28 }
0x1213   :  { %v1506_v26 = vsel %vm1505_vm12, %v1783_v19, %v1502_v29 }
0x1214   :  { %v1511_v30 = vsel %vm1508_vm13, %v1510_v22, %v1506_v26 }
0x1215   :  { %1531 = vrot.lane.b32.xlu0 %v1511_v30, %s1890_s9  ;;  %s1892_s9 = smov [#allocation11]  }
0x1216   :  { %s1561_s1 = sshll.u32 %s1892_s9, 4  ;;  %s1562_s1 = int_to_ptr.vmem [resolvable:$true] %s1561_s1 }
0x1256   :  { %v1427_v60 = vpop.permute.xlu1 %1426 }
0x1257   :  { %v1429_v15 = vmul.f32 %v1427_v60, %v1421_v9 }
0x1259   :  { %1431 = vrot.lane.b32.xlu1 %v1429_v15, %s1889_s17 }
0x1274   :  { %v1514_v32 = vpop.permute.xlu0 %1513 }
0x1275   :  { %v1516_v34 = vmul.f32 %v1775_v51, %v1514_v32 }
0x1277   :  { %v1529_v0 = vadd.f32 %v1527_v20, %v1516_v34 }
0x1287   :  { %v1532_v35 = vpop.permute.xlu0 %1531 }
0x1288   :  { %v1534_v36 = vmul.f32 %v1532_v35, %v1529_v0 }
0x128a   :  { %1540 = vrot.lane.b32.xlu2 %v1534_v36, %s1891_s12 }
0x12cb   :  { %v1432_v57 = vpop.permute.xlu1 %1431 }
0x12cc   :  { %v1434_v38 = vadd.f32 %v1432_v57, %v1424_v16 }
0x12e4   :  { %v1541_v17 = vpop.permute.xlu2 %1540 }
0x12e5   :  { %v1543_v39 = vsel %vm1538_vm14, %v1434_v38, %v1541_v17 }
0x12e6   :  { %1784 = vtanh.f32 %v1543_v39 }
0x12ec   :  { %v1785_v40 = vpop.eup %1784 }
0x12ed   :  { %1546 = vrot.lane.b32.xlu0 %v1785_v40, %s1889_s17 }
0x135f   :  { %v1547_v41 = vpop.permute.xlu0 %1546 }
0x1360   :  { %v1549_v42 = vmul.f32 %v1547_v41, %v1421_v9 }
0x1362   :  { %1551 = vrot.lane.b32.xlu1 %v1549_v42, %s1891_s12 }
0x13d4   :  { %v1552_v43 = vpop.permute.xlu1 %1551 }
0x13d5   :  { %v1554_v24 = vsel %vm84_vm0, %v1552_v43, %v1543_v39 }
0x13d6   :  { %1555 = vst.msk [vmem:[#allocation11 + $0x7] sm:$0x1] %vm329_vm5, %v1554_v24 }
0x13d7   :  { %1566 = dma.vmem_to_hbm [thread:$0]  %s1562_s1, 128, %s1564_s15, [#allocation8]  }
0x13d8   :  { %1882 = dma.done.wait [#allocation8], 128  }
0x13d9   :  { %1883 = vsyncadd [#allocation8], 4294967168 }
0x13da   :  { %1571 = vsyncpa [#allocation7], 1 }
0x13db   :  { %1572 = vsyncpa [#allocation10], 1 }
0x13dc   :  { %1573 = vsyncpa [#allocation8], 1 }

</bundles_post_ra>
